<compile_context>
chip_gen: v7x
topology: tpu7x:2x2x1
jax: 0.10.0
libtpu: 0.0.40
codegen_flags: <defaults>
</compile_context>

<pallas_src>
from functools import partial

import jax
import jax.numpy as jnp
from jax import lax
from jax.experimental import pallas as pl
from jax.experimental.pallas import tpu as pltpu

NEG_SLOPE = 0.2          # GATConv default negative_slope
MASK_VALUE = -1e30


def _gat_layer_kernel(x_ref, w_ref, asrc_ref, adst_ref, bias_ref, adj_ref,
                      out_ref, xw_sc, asrc_sc, adst_sc,
                      *, heads, out_ch, tm, activation):
    """One GATConv layer (all heads fused); grid axis 0 = target-node row tiles."""
    i = pl.program_id(0)

    # ---- per-layer preamble: only on the first row tile (scratch persists) ----
    @pl.when(i == 0)
    def _():
        x = x_ref[...]                                        # [N, Fin]
        w = w_ref[...]                                        # [Fin, H*C]
        xw = jnp.dot(x.astype(jnp.bfloat16), w.astype(jnp.bfloat16),
                     preferred_element_type=jnp.float32)      # [N, H*C] f32 acc
        xw_sc[...] = xw
        # alpha_src[h, j] = a_src_h . xw_h[j]   -> [H, N] (row-major, ready to bcast)
        asrc_sc[...] = lax.dot_general(
            asrc_ref[...], xw, (((1,), (1,)), ((), ())),
            preferred_element_type=jnp.float32)
        # alpha_dst[i, h] = a_dst_h . xw_h[i]   -> [N, H]
        adst_sc[...] = jnp.dot(xw, adst_ref[...],
                               preferred_element_type=jnp.float32)

    row0 = pl.multiple_of(i * tm, tm)

    adj = adj_ref[...]                                        # [TM, N] int8
    mask = adj != 0

    xw_all = xw_sc[...]                                       # [N, H*C]
    asrc_all = asrc_sc[...]                                   # [H, N]
    adst_tile = adst_sc[pl.ds(row0, tm), :]                   # [TM, H]

    outs = []
    for h in range(heads):                                    # static unroll; heads is tiny
        xw_h = xw_all[:, h * out_ch:(h + 1) * out_ch]         # [N, C]
        e = adst_tile[:, h:h + 1] + asrc_all[h:h + 1, :]      # [TM, N]
        e = jnp.maximum(e, NEG_SLOPE * e)                     # LeakyReLU(0.2)
        e = jnp.where(mask, e, MASK_VALUE)
        # Softmax over source nodes j.  Self-loops guarantee >= 1 live entry per
        # row; masked entries underflow to exactly 0 after the exp (no re-mask).
        m = jnp.max(e, axis=-1, keepdims=True)                # [TM, 1]
        p = jnp.exp(e - m)                                    # [TM, N]
        denom = jnp.sum(p, axis=-1, keepdims=True)            # [TM, 1]
        o_h = jnp.dot(p.astype(jnp.bfloat16), xw_h.astype(jnp.bfloat16),
                      preferred_element_type=jnp.float32)     # [TM, C]
        # Normalize AFTER the matmul: N*C multiplies + one approx EUP recip.
        outs.append(o_h * pl.reciprocal(denom, approx=True))

    out = outs[0] if heads == 1 else jnp.concatenate(outs, axis=-1)  # [TM, H*C]
    out = out + bias_ref[...]                                 # bias fused in-kernel

    if activation == "elu":                                   # F.elu (alpha=1)
        out = jnp.where(out > 0, out, jnp.exp(jnp.minimum(out, 0.0)) - 1.0)
    elif activation == "log_softmax":                         # log_softmax(dim=1)
        mx = jnp.max(out, axis=-1, keepdims=True)
        z = out - mx
        out = z - jnp.log(jnp.sum(jnp.exp(z), axis=-1, keepdims=True))

    out_ref[...] = out


def gat_layer(x, adj_i8, params, *, heads, out_ch, activation=None, tm=None):
    """One GATConv layer (concat=True, bias, negative_slope=0.2) with the given
    activation ('elu' / 'log_softmax' / None) fused into the epilogue."""
    N, f_in = x.shape
    W, att_src, att_dst, bias = params                        # W [Fin, H*C]
    hc = heads * out_ch

    if tm is None:
        # Row tile.  For large N keep (e, p, adj tile) VMEM-resident per tile;
        # on v7x (64 MiB VMEM) shrink this further if N is very large.
        tm = N if N <= 256 else 256
    tm = min(tm, N)
    assert N % tm == 0, "N must be a multiple of the row tile"

    # Block-diagonal projection matrices so every head's attention scalars come
    # from a single matmul:
    #   asrc_T[h, g*C + c] = att_src[h, c] * (h == g)   -> [H, H*C]
    #   adst_P[g*C + c, h] = att_dst[h, c] * (h == g)   -> [H*C, H]
    eye = jnp.eye(heads, dtype=jnp.float32)
    asrc_T = (att_src[:, None, :] * eye[:, :, None]).reshape(heads, hc)
    adst_P = (att_dst[:, None, :] * eye[:, :, None]).reshape(heads, hc).T

    kernel = partial(_gat_layer_kernel, heads=heads, out_ch=out_ch,
                     tm=tm, activation=activation)

    return pl.pallas_call(
        kernel,
        out_shape=jax.ShapeDtypeStruct((N, hc), jnp.float32),
        grid=(N // tm,),
        in_specs=[
            pl.BlockSpec((N, f_in), lambda i: (0, 0)),        # x (resident)
            pl.BlockSpec((f_in, hc), lambda i: (0, 0)),       # W, all heads
            pl.BlockSpec((heads, hc), lambda i: (0, 0)),      # a_src projection
            pl.BlockSpec((hc, heads), lambda i: (0, 0)),      # a_dst projection
            pl.BlockSpec((1, hc), lambda i: (0, 0)),          # bias
            pl.BlockSpec((tm, N), lambda i: (i, 0)),          # int8 adjacency rows
        ],
        out_specs=pl.BlockSpec((tm, hc), lambda i: (i, 0)),   # lane-dense [TM, H*C]
        scratch_shapes=[
            pltpu.VMEM((N, hc), jnp.float32),                 # xw (all heads)
            pltpu.VMEM((heads, N), jnp.float32),              # alpha_src rows
            pltpu.VMEM((N, heads), jnp.float32),              # alpha_dst cols
        ],
        # Row tiles are NOT independent (tile 0 fills the shared VMEM scratch
        # consumed by later tiles), so this axis must stay "arbitrary".
        compiler_params=pltpu.CompilerParams(
            dimension_semantics=("arbitrary",)),
    )(x, W, asrc_T, adst_P, bias.reshape(1, hc), adj_i8)


def gat_forward(x, adj_i8, params1, params2, *, first_heads, nhid,
                output_heads, n_classes, tm=None):
    # F.dropout: identity in eval mode.
    h = gat_layer(x, adj_i8, params1, heads=first_heads, out_ch=nhid,
                  activation="elu", tm=tm)                    # gc1 + F.elu (fused)
    # F.dropout: identity in eval mode.
    return gat_layer(h, adj_i8, params2, heads=output_heads, out_ch=n_classes,
                     activation="log_softmax", tm=tm)         # gc2 + log_softmax (fused)


def init_gatconv_params(key, f_in, out_ch, heads):
    k1, k2, k3 = jax.random.split(key, 3)
    scale_w = (2.0 / (f_in + heads * out_ch)) ** 0.5
    W = scale_w * jax.random.normal(k1, (f_in, heads * out_ch), jnp.float32)
    att_src = 0.1 * jax.random.normal(k2, (heads, out_ch), jnp.float32)
    att_dst = 0.1 * jax.random.normal(k3, (heads, out_ch), jnp.float32)
    bias = jnp.zeros((heads * out_ch,), jnp.float32)
    return W, att_src, att_dst, bias


if __name__ == "__main__":
    # Small deterministic problem consistent with the module's forward.
    N = 32                 # number of graph nodes
    num_features = 32      # dataset.num_features
    nhid = 16
    first_heads = 4
    num_classes = 8        # dataset.num_classes
    output_heads = 1

    key = jax.random.PRNGKey(0)
    kx, k1, k2 = jax.random.split(key, 3)
    x = jax.random.normal(kx, (N, num_features), jnp.float32)

    # Deterministic graph: bidirectional ring with skip connections (int8 mask).
    src_list, dst_list = [], []
    for i in range(N):
        for d in (1, 2, 5):
            j = (i + d) % N
            src_list += [i, j]
            dst_list += [j, i]
    adj = jnp.zeros((N, N), jnp.int8)
    adj = adj.at[jnp.array(dst_list), jnp.array(src_list)].set(1)  # adj[target, source]
    adj = adj.at[jnp.arange(N), jnp.arange(N)].set(1)              # self-loops

    params1 = init_gatconv_params(k1, num_features, nhid, first_heads)
    params2 = init_gatconv_params(k2, nhid * first_heads, num_classes,
                                  output_heads)

    fwd = jax.jit(partial(gat_forward, first_heads=first_heads, nhid=nhid,
                          output_heads=output_heads, n_classes=num_classes))
    out = fwd(x, adj, params1, params2)
    jax.block_until_ready(out)

    assert out.shape == (N, num_classes * output_heads)
    assert bool(jnp.all(jnp.isfinite(out)))
    # rows of log_softmax must exp-sum to 1
    assert bool(jnp.allclose(jnp.sum(jnp.exp(out), axis=1), 1.0, atol=1e-4))
    print("KERNEL_OK")
</pallas_src>

<mosaic_0001>
module attributes {stable_mosaic.version = 11 : i64} {
  func.func @_gat_layer_kernel(%arg0: i32, %arg1: memref<32x32xf32, #tpu.memory_space<vmem>>, %arg2: memref<32x64xf32, #tpu.memory_space<vmem>>, %arg3: memref<4x64xf32, #tpu.memory_space<vmem>>, %arg4: memref<64x4xf32, #tpu.memory_space<vmem>>, %arg5: memref<1x64xf32, #tpu.memory_space<vmem>>, %arg6: memref<32x32xi8, #tpu.memory_space<vmem>>, %arg7: memref<32x64xf32, #tpu.memory_space<vmem>>, %arg8: memref<32x64xf32, #tpu.memory_space<vmem>>, %arg9: memref<4x32xf32, #tpu.memory_space<vmem>>, %arg10: memref<32x4xf32, #tpu.memory_space<vmem>>) attributes {dimension_semantics = [#tpu.dimension_semantics<arbitrary>], iteration_bounds = array<i64: 1>, scalar_prefetch = 0 : i64, scratch_operands = 3 : i64, tpu.core_type = #tpu.core_type<tc>, window_params = [{pipeline_mode = #tpu.pipeline_mode<synchronous>, transform_indices = @transform_0, window_bounds = array<i64: 32, 32>}, {pipeline_mode = #tpu.pipeline_mode<synchronous>, transform_indices = @transform_1, window_bounds = array<i64: 32, 64>}, {pipeline_mode = #tpu.pipeline_mode<synchronous>, transform_indices = @transform_2, window_bounds = array<i64: 4, 64>}, {pipeline_mode = #tpu.pipeline_mode<synchronous>, transform_indices = @transform_3, window_bounds = array<i64: 64, 4>}, {pipeline_mode = #tpu.pipeline_mode<synchronous>, transform_indices = @transform_4, window_bounds = array<i64: 1, 64>}, {transform_indices = @transform_5, window_bounds = array<i64: 32, 32>}, {transform_indices = @transform_6, window_bounds = array<i64: 32, 64>}]} {
    %c0_i32 = arith.constant 0 : i32
    %0 = arith.cmpi eq, %arg0, %c0_i32 : i32
    %1 = arith.extui %0 : i1 to i32
    %c0_i32_0 = arith.constant 0 : i32
    %2 = arith.cmpi ne, %1, %c0_i32_0 : i32
    scf.if %2 {
      %c0_33 = arith.constant 0 : index
      %c0_34 = arith.constant 0 : index
      %121 = vector.load %arg1[%c0_33, %c0_34] : memref<32x32xf32, #tpu.memory_space<vmem>>, vector<32x32xf32>
      %c0_35 = arith.constant 0 : index
      %c0_36 = arith.constant 0 : index
      %122 = vector.load %arg2[%c0_35, %c0_36] : memref<32x64xf32, #tpu.memory_space<vmem>>, vector<32x64xf32>
      %123 = arith.truncf %121 : vector<32x32xf32> to vector<32x32xbf16>
      %124 = arith.truncf %122 : vector<32x64xf32> to vector<32x64xbf16>
      %cst_37 = arith.constant dense<0.000000e+00> : vector<32x64xf32>
      %125 = tpu.matmul %123, %124, %cst_37 {dimension_numbers = #tpu.dot_dimension_numbers<[1], [0], [0], [1], [0, 0, 1, 1], [], []>} : vector<32x32xbf16>, vector<32x64xbf16>, vector<32x64xf32> -> vector<32x64xf32>
      %c0_38 = arith.constant 0 : index
      %c0_39 = arith.constant 0 : index
      %126 = vector.load %arg8[%c0_38, %c0_39] : memref<32x64xf32, #tpu.memory_space<vmem>>, vector<32x64xf32>
      tpu.vector_store %arg8[%c0_38, %c0_39], %125 {strides = array<i32>} : memref<32x64xf32, #tpu.memory_space<vmem>>, vector<32x64xf32>,
      %c0_40 = arith.constant 0 : index
      %c0_41 = arith.constant 0 : index
      %127 = vector.load %arg3[%c0_40, %c0_41] : memref<4x64xf32, #tpu.memory_space<vmem>>, vector<4x64xf32>
      %cst_42 = arith.constant dense<0.000000e+00> : vector<4x32xf32>
      %128 = tpu.matmul %127, %125, %cst_42 {dimension_numbers = #tpu.dot_dimension_numbers<[1], [1], [0], [0], [0, 0, 1, 0], [], []>} : vector<4x64xf32>, vector<32x64xf32>, vector<4x32xf32> -> vector<4x32xf32>
      %c0_43 = arith.constant 0 : index
      %c0_44 = arith.constant 0 : index
      %129 = vector.load %arg9[%c0_43, %c0_44] : memref<4x32xf32, #tpu.memory_space<vmem>>, vector<4x32xf32>
      tpu.vector_store %arg9[%c0_43, %c0_44], %128 {strides = array<i32>} : memref<4x32xf32, #tpu.memory_space<vmem>>, vector<4x32xf32>,
      %c0_45 = arith.constant 0 : index
      %c0_46 = arith.constant 0 : index
      %130 = vector.load %arg4[%c0_45, %c0_46] : memref<64x4xf32, #tpu.memory_space<vmem>>, vector<64x4xf32>
      %cst_47 = arith.constant dense<0.000000e+00> : vector<32x4xf32>
      %131 = tpu.matmul %125, %130, %cst_47 {dimension_numbers = #tpu.dot_dimension_numbers<[1], [0], [0], [1], [0, 0, 1, 1], [], []>} : vector<32x64xf32>, vector<64x4xf32>, vector<32x4xf32> -> vector<32x4xf32>
      %c0_48 = arith.constant 0 : index
      %c0_49 = arith.constant 0 : index
      %132 = vector.load %arg10[%c0_48, %c0_49] : memref<32x4xf32, #tpu.memory_space<vmem>>, vector<32x4xf32>
      tpu.vector_store %arg10[%c0_48, %c0_49], %131 {strides = array<i32>} : memref<32x4xf32, #tpu.memory_space<vmem>>, vector<32x4xf32>,
    } else {
    }
    %c32_i32 = arith.constant 32 : i32
    %3 = arith.muli %arg0, %c32_i32 : i32
    %4 = tpu.assume_multiple %3, 32 : i32
    %c0 = arith.constant 0 : index
    %c0_1 = arith.constant 0 : index
    %5 = vector.load %arg6[%c0, %c0_1] : memref<32x32xi8, #tpu.memory_space<vmem>>, vector<32x32xi8>
    %c0_i8 = arith.constant 0 : i8
    %6 = vector.broadcast %c0_i8 : i8 to vector<32x32xi8>
    %7 = arith.cmpi ne, %5, %6 : vector<32x32xi8>
    %c0_2 = arith.constant 0 : index
    %c0_3 = arith.constant 0 : index
    %8 = vector.load %arg8[%c0_2, %c0_3] : memref<32x64xf32, #tpu.memory_space<vmem>>, vector<32x64xf32>
    %c0_4 = arith.constant 0 : index
    %c0_5 = arith.constant 0 : index
    %9 = vector.load %arg9[%c0_4, %c0_5] : memref<4x32xf32, #tpu.memory_space<vmem>>, vector<4x32xf32>
    %10 = arith.index_cast %4 : i32 to index
    %c0_6 = arith.constant 0 : index
    %11 = vector.load %arg10[%10, %c0_6] : memref<32x4xf32, #tpu.memory_space<vmem>>, vector<32x4xf32>
    %12 = vector.extract_strided_slice %8 {offsets = [0, 0], sizes = [32, 16], strides = [1, 1]} : vector<32x64xf32> to vector<32x16xf32>
    %13 = vector.extract_strided_slice %11 {offsets = [0, 0], sizes = [32, 1], strides = [1, 1]} : vector<32x4xf32> to vector<32x1xf32>
    %14 = vector.extract_strided_slice %9 {offsets = [0, 0], sizes = [1, 32], strides = [1, 1]} : vector<4x32xf32> to vector<1x32xf32>
    %15 = vector.broadcast %13 : vector<32x1xf32> to vector<32x32xf32>
    %16 = vector.broadcast %14 : vector<1x32xf32> to vector<32x32xf32>
    %17 = arith.addf %15, %16 : vector<32x32xf32>
    %cst = arith.constant 2.000000e-01 : f32
    %18 = vector.broadcast %cst : f32 to vector<32x32xf32>
    %19 = arith.mulf %18, %17 : vector<32x32xf32>
    %20 = arith.maximumf %17, %19 : vector<32x32xf32>
    %cst_7 = arith.constant -1.000000e+30 : f32
    %21 = vector.broadcast %cst_7 : f32 to vector<32x32xf32>
    %22 = arith.select %7, %20, %21 : vector<32x32xi1>, vector<32x32xf32>
    %cst_8 = arith.constant dense<0xFF800000> : vector<32xf32>
    %23 = vector.multi_reduction <maximumf>, %22, %cst_8 [1] : vector<32x32xf32> to vector<32xf32>
    %24 = vector.shape_cast %23 : vector<32xf32> to vector<32x1xf32>
    %25 = vector.broadcast %24 : vector<32x1xf32> to vector<32x32xf32>
    %26 = arith.subf %22, %25 : vector<32x32xf32>
    %27 = math.exp %26 : vector<32x32xf32>
    %cst_9 = arith.constant dense<0.000000e+00> : vector<32xf32>
    %28 = vector.multi_reduction <add>, %27, %cst_9 [1] : vector<32x32xf32> to vector<32xf32>
    %29 = vector.shape_cast %28 : vector<32xf32> to vector<32x1xf32>
    %30 = arith.truncf %27 : vector<32x32xf32> to vector<32x32xbf16>
    %31 = arith.truncf %12 : vector<32x16xf32> to vector<32x16xbf16>
    %cst_10 = arith.constant dense<0.000000e+00> : vector<32x16xf32>
    %32 = tpu.matmul %30, %31, %cst_10 {dimension_numbers = #tpu.dot_dimension_numbers<[1], [0], [0], [1], [0, 0, 1, 1], [], []>} : vector<32x32xbf16>, vector<32x16xbf16>, vector<32x16xf32> -> vector<32x16xf32>
    %33 = tpu.reciprocal %29 {approx = true} : vector<32x1xf32> -> vector<32x1xf32>
    %34 = vector.broadcast %33 : vector<32x1xf32> to vector<32x16xf32>
    %35 = arith.mulf %32, %34 : vector<32x16xf32>
    %36 = vector.extract_strided_slice %8 {offsets = [0, 16], sizes = [32, 16], strides = [1, 1]} : vector<32x64xf32> to vector<32x16xf32>
    %37 = vector.extract_strided_slice %11 {offsets = [0, 1], sizes = [32, 1], strides = [1, 1]} : vector<32x4xf32> to vector<32x1xf32>
    %38 = vector.extract_strided_slice %9 {offsets = [1, 0], sizes = [1, 32], strides = [1, 1]} : vector<4x32xf32> to vector<1x32xf32>
    %39 = vector.broadcast %37 : vector<32x1xf32> to vector<32x32xf32>
    %40 = vector.broadcast %38 : vector<1x32xf32> to vector<32x32xf32>
    %41 = arith.addf %39, %40 : vector<32x32xf32>
    %cst_11 = arith.constant 2.000000e-01 : f32
    %42 = vector.broadcast %cst_11 : f32 to vector<32x32xf32>
    %43 = arith.mulf %42, %41 : vector<32x32xf32>
    %44 = arith.maximumf %41, %43 : vector<32x32xf32>
    %cst_12 = arith.constant -1.000000e+30 : f32
    %45 = vector.broadcast %cst_12 : f32 to vector<32x32xf32>
    %46 = arith.select %7, %44, %45 : vector<32x32xi1>, vector<32x32xf32>
    %cst_13 = arith.constant dense<0xFF800000> : vector<32xf32>
    %47 = vector.multi_reduction <maximumf>, %46, %cst_13 [1] : vector<32x32xf32> to vector<32xf32>
    %48 = vector.shape_cast %47 : vector<32xf32> to vector<32x1xf32>
    %49 = vector.broadcast %48 : vector<32x1xf32> to vector<32x32xf32>
    %50 = arith.subf %46, %49 : vector<32x32xf32>
    %51 = math.exp %50 : vector<32x32xf32>
    %cst_14 = arith.constant dense<0.000000e+00> : vector<32xf32>
    %52 = vector.multi_reduction <add>, %51, %cst_14 [1] : vector<32x32xf32> to vector<32xf32>
    %53 = vector.shape_cast %52 : vector<32xf32> to vector<32x1xf32>
    %54 = arith.truncf %51 : vector<32x32xf32> to vector<32x32xbf16>
    %55 = arith.truncf %36 : vector<32x16xf32> to vector<32x16xbf16>
    %cst_15 = arith.constant dense<0.000000e+00> : vector<32x16xf32>
    %56 = tpu.matmul %54, %55, %cst_15 {dimension_numbers = #tpu.dot_dimension_numbers<[1], [0], [0], [1], [0, 0, 1, 1], [], []>} : vector<32x32xbf16>, vector<32x16xbf16>, vector<32x16xf32> -> vector<32x16xf32>
    %57 = tpu.reciprocal %53 {approx = true} : vector<32x1xf32> -> vector<32x1xf32>
    %58 = vector.broadcast %57 : vector<32x1xf32> to vector<32x16xf32>
    %59 = arith.mulf %56, %58 : vector<32x16xf32>
    %60 = vector.extract_strided_slice %8 {offsets = [0, 32], sizes = [32, 16], strides = [1, 1]} : vector<32x64xf32> to vector<32x16xf32>
    %61 = vector.extract_strided_slice %11 {offsets = [0, 2], sizes = [32, 1], strides = [1, 1]} : vector<32x4xf32> to vector<32x1xf32>
    %62 = vector.extract_strided_slice %9 {offsets = [2, 0], sizes = [1, 32], strides = [1, 1]} : vector<4x32xf32> to vector<1x32xf32>
    %63 = vector.broadcast %61 : vector<32x1xf32> to vector<32x32xf32>
    %64 = vector.broadcast %62 : vector<1x32xf32> to vector<32x32xf32>
    %65 = arith.addf %63, %64 : vector<32x32xf32>
    %cst_16 = arith.constant 2.000000e-01 : f32
    %66 = vector.broadcast %cst_16 : f32 to vector<32x32xf32>
    %67 = arith.mulf %66, %65 : vector<32x32xf32>
    %68 = arith.maximumf %65, %67 : vector<32x32xf32>
    %cst_17 = arith.constant -1.000000e+30 : f32
    %69 = vector.broadcast %cst_17 : f32 to vector<32x32xf32>
    %70 = arith.select %7, %68, %69 : vector<32x32xi1>, vector<32x32xf32>
    %cst_18 = arith.constant dense<0xFF800000> : vector<32xf32>
    %71 = vector.multi_reduction <maximumf>, %70, %cst_18 [1] : vector<32x32xf32> to vector<32xf32>
    %72 = vector.shape_cast %71 : vector<32xf32> to vector<32x1xf32>
    %73 = vector.broadcast %72 : vector<32x1xf32> to vector<32x32xf32>
    %74 = arith.subf %70, %73 : vector<32x32xf32>
    %75 = math.exp %74 : vector<32x32xf32>
    %cst_19 = arith.constant dense<0.000000e+00> : vector<32xf32>
    %76 = vector.multi_reduction <add>, %75, %cst_19 [1] : vector<32x32xf32> to vector<32xf32>
    %77 = vector.shape_cast %76 : vector<32xf32> to vector<32x1xf32>
    %78 = arith.truncf %75 : vector<32x32xf32> to vector<32x32xbf16>
    %79 = arith.truncf %60 : vector<32x16xf32> to vector<32x16xbf16>
    %cst_20 = arith.constant dense<0.000000e+00> : vector<32x16xf32>
    %80 = tpu.matmul %78, %79, %cst_20 {dimension_numbers = #tpu.dot_dimension_numbers<[1], [0], [0], [1], [0, 0, 1, 1], [], []>} : vector<32x32xbf16>, vector<32x16xbf16>, vector<32x16xf32> -> vector<32x16xf32>
    %81 = tpu.reciprocal %77 {approx = true} : vector<32x1xf32> -> vector<32x1xf32>
    %82 = vector.broadcast %81 : vector<32x1xf32> to vector<32x16xf32>
    %83 = arith.mulf %80, %82 : vector<32x16xf32>
    %84 = vector.extract_strided_slice %8 {offsets = [0, 48], sizes = [32, 16], strides = [1, 1]} : vector<32x64xf32> to vector<32x16xf32>
    %85 = vector.extract_strided_slice %11 {offsets = [0, 3], sizes = [32, 1], strides = [1, 1]} : vector<32x4xf32> to vector<32x1xf32>
    %86 = vector.extract_strided_slice %9 {offsets = [3, 0], sizes = [1, 32], strides = [1, 1]} : vector<4x32xf32> to vector<1x32xf32>
    %87 = vector.broadcast %85 : vector<32x1xf32> to vector<32x32xf32>
    %88 = vector.broadcast %86 : vector<1x32xf32> to vector<32x32xf32>
    %89 = arith.addf %87, %88 : vector<32x32xf32>
    %cst_21 = arith.constant 2.000000e-01 : f32
    %90 = vector.broadcast %cst_21 : f32 to vector<32x32xf32>
    %91 = arith.mulf %90, %89 : vector<32x32xf32>
    %92 = arith.maximumf %89, %91 : vector<32x32xf32>
    %cst_22 = arith.constant -1.000000e+30 : f32
    %93 = vector.broadcast %cst_22 : f32 to vector<32x32xf32>
    %94 = arith.select %7, %92, %93 : vector<32x32xi1>, vector<32x32xf32>
    %cst_23 = arith.constant dense<0xFF800000> : vector<32xf32>
    %95 = vector.multi_reduction <maximumf>, %94, %cst_23 [1] : vector<32x32xf32> to vector<32xf32>
    %96 = vector.shape_cast %95 : vector<32xf32> to vector<32x1xf32>
    %97 = vector.broadcast %96 : vector<32x1xf32> to vector<32x32xf32>
    %98 = arith.subf %94, %97 : vector<32x32xf32>
    %99 = math.exp %98 : vector<32x32xf32>
    %cst_24 = arith.constant dense<0.000000e+00> : vector<32xf32>
    %100 = vector.multi_reduction <add>, %99, %cst_24 [1] : vector<32x32xf32> to vector<32xf32>
    %101 = vector.shape_cast %100 : vector<32xf32> to vector<32x1xf32>
    %102 = arith.truncf %99 : vector<32x32xf32> to vector<32x32xbf16>
    %103 = arith.truncf %84 : vector<32x16xf32> to vector<32x16xbf16>
    %cst_25 = arith.constant dense<0.000000e+00> : vector<32x16xf32>
    %104 = tpu.matmul %102, %103, %cst_25 {dimension_numbers = #tpu.dot_dimension_numbers<[1], [0], [0], [1], [0, 0, 1, 1], [], []>} : vector<32x32xbf16>, vector<32x16xbf16>, vector<32x16xf32> -> vector<32x16xf32>
    %105 = tpu.reciprocal %101 {approx = true} : vector<32x1xf32> -> vector<32x1xf32>
    %106 = vector.broadcast %105 : vector<32x1xf32> to vector<32x16xf32>
    %107 = arith.mulf %104, %106 : vector<32x16xf32>
    %108 = tpu.concatenate %35, %59, %83, %107 in 1 : vector<32x16xf32>, vector<32x16xf32>, vector<32x16xf32>, vector<32x16xf32> -> vector<32x64xf32>
    %c0_26 = arith.constant 0 : index
    %c0_27 = arith.constant 0 : index
    %109 = vector.load %arg5[%c0_26, %c0_27] : memref<1x64xf32, #tpu.memory_space<vmem>>, vector<1x64xf32>
    %110 = vector.broadcast %109 : vector<1x64xf32> to vector<32x64xf32>
    %111 = arith.addf %108, %110 : vector<32x64xf32>
    %cst_28 = arith.constant 0.000000e+00 : f32
    %112 = vector.broadcast %cst_28 : f32 to vector<32x64xf32>
    %113 = arith.cmpf ogt, %111, %112 : vector<32x64xf32>
    %cst_29 = arith.constant 0.000000e+00 : f32
    %114 = vector.broadcast %cst_29 : f32 to vector<32x64xf32>
    %115 = arith.minimumf %111, %114 : vector<32x64xf32>
    %116 = math.exp %115 : vector<32x64xf32>
    %cst_30 = arith.constant 1.000000e+00 : f32
    %117 = vector.broadcast %cst_30 : f32 to vector<32x64xf32>
    %118 = arith.subf %116, %117 : vector<32x64xf32>
    %119 = arith.select %113, %111, %118 : vector<32x64xi1>, vector<32x64xf32>
    %c0_31 = arith.constant 0 : index
    %c0_32 = arith.constant 0 : index
    %120 = vector.load %arg7[%c0_31, %c0_32] : memref<32x64xf32, #tpu.memory_space<vmem>>, vector<32x64xf32>
    tpu.vector_store %arg7[%c0_31, %c0_32], %119 {strides = array<i32>} : memref<32x64xf32, #tpu.memory_space<vmem>>, vector<32x64xf32>,
    return
  }
  func.func @transform_0(%arg0: i32) -> (i32, i32) {
    %c0_i32 = arith.constant 0 : i32
    %c0_i32_0 = arith.constant 0 : i32
    %c0_i32_1 = arith.constant 0 : i32
    return %c0_i32, %c0_i32_0 : i32, i32
  }
  func.func @transform_1(%arg0: i32) -> (i32, i32) {
    %c0_i32 = arith.constant 0 : i32
    %c0_i32_0 = arith.constant 0 : i32
    %c0_i32_1 = arith.constant 0 : i32
    return %c0_i32, %c0_i32_0 : i32, i32
  }
  func.func @transform_2(%arg0: i32) -> (i32, i32) {
    %c0_i32 = arith.constant 0 : i32
    %c0_i32_0 = arith.constant 0 : i32
    %c0_i32_1 = arith.constant 0 : i32
    return %c0_i32, %c0_i32_0 : i32, i32
  }
  func.func @transform_3(%arg0: i32) -> (i32, i32) {
    %c0_i32 = arith.constant 0 : i32
    %c0_i32_0 = arith.constant 0 : i32
    %c0_i32_1 = arith.constant 0 : i32
    return %c0_i32, %c0_i32_0 : i32, i32
  }
  func.func @transform_4(%arg0: i32) -> (i32, i32) {
    %c0_i32 = arith.constant 0 : i32
    %c0_i32_0 = arith.constant 0 : i32
    %c0_i32_1 = arith.constant 0 : i32
    return %c0_i32, %c0_i32_0 : i32, i32
  }
  func.func @transform_5(%arg0: i32) -> (i32, i32) {
    %c0_i32 = arith.constant 0 : i32
    %c0_i32_0 = arith.constant 0 : i32
    return %arg0, %c0_i32 : i32, i32
  }
  func.func @transform_6(%arg0: i32) -> (i32, i32) {
    %c0_i32 = arith.constant 0 : i32
    %c0_i32_0 = arith.constant 0 : i32
    return %arg0, %c0_i32 : i32, i32
  }
}

module attributes {stable_mosaic.version = 11 : i64} {
  func.func @_gat_layer_kernel(%arg0: i32, %arg1: memref<32x64xf32, #tpu.memory_space<vmem>>, %arg2: memref<64x8xf32, #tpu.memory_space<vmem>>, %arg3: memref<1x8xf32, #tpu.memory_space<vmem>>, %arg4: memref<8x1xf32, #tpu.memory_space<vmem>>, %arg5: memref<1x8xf32, #tpu.memory_space<vmem>>, %arg6: memref<32x32xi8, #tpu.memory_space<vmem>>, %arg7: memref<32x8xf32, #tpu.memory_space<vmem>>, %arg8: memref<32x8xf32, #tpu.memory_space<vmem>>, %arg9: memref<1x32xf32, #tpu.memory_space<vmem>>, %arg10: memref<32x1xf32, #tpu.memory_space<vmem>>) attributes {dimension_semantics = [#tpu.dimension_semantics<arbitrary>], iteration_bounds = array<i64: 1>, scalar_prefetch = 0 : i64, scratch_operands = 3 : i64, tpu.core_type = #tpu.core_type<tc>, window_params = [{pipeline_mode = #tpu.pipeline_mode<synchronous>, transform_indices = @transform_0, window_bounds = array<i64: 32, 64>}, {pipeline_mode = #tpu.pipeline_mode<synchronous>, transform_indices = @transform_1, window_bounds = array<i64: 64, 8>}, {pipeline_mode = #tpu.pipeline_mode<synchronous>, transform_indices = @transform_2, window_bounds = array<i64: 1, 8>}, {pipeline_mode = #tpu.pipeline_mode<synchronous>, transform_indices = @transform_3, window_bounds = array<i64: 8, 1>}, {pipeline_mode = #tpu.pipeline_mode<synchronous>, transform_indices = @transform_4, window_bounds = array<i64: 1, 8>}, {transform_indices = @transform_5, window_bounds = array<i64: 32, 32>}, {transform_indices = @transform_6, window_bounds = array<i64: 32, 8>}]} {
    %c0_i32 = arith.constant 0 : i32
    %0 = arith.cmpi eq, %arg0, %c0_i32 : i32
    %1 = arith.extui %0 : i1 to i32
    %c0_i32_0 = arith.constant 0 : i32
    %2 = arith.cmpi ne, %1, %c0_i32_0 : i32
    scf.if %2 {
      %c0_17 = arith.constant 0 : index
      %c0_18 = arith.constant 0 : index
      %47 = vector.load %arg1[%c0_17, %c0_18] : memref<32x64xf32, #tpu.memory_space<vmem>>, vector<32x64xf32>
      %c0_19 = arith.constant 0 : index
      %c0_20 = arith.constant 0 : index
      %48 = vector.load %arg2[%c0_19, %c0_20] : memref<64x8xf32, #tpu.memory_space<vmem>>, vector<64x8xf32>
      %49 = arith.truncf %47 : vector<32x64xf32> to vector<32x64xbf16>
      %50 = arith.truncf %48 : vector<64x8xf32> to vector<64x8xbf16>
      %cst_21 = arith.constant dense<0.000000e+00> : vector<32x8xf32>
      %51 = tpu.matmul %49, %50, %cst_21 {dimension_numbers = #tpu.dot_dimension_numbers<[1], [0], [0], [1], [0, 0, 1, 1], [], []>} : vector<32x64xbf16>, vector<64x8xbf16>, vector<32x8xf32> -> vector<32x8xf32>
      %c0_22 = arith.constant 0 : index
      %c0_23 = arith.constant 0 : index
      %52 = vector.load %arg8[%c0_22, %c0_23] : memref<32x8xf32, #tpu.memory_space<vmem>>, vector<32x8xf32>
      tpu.vector_store %arg8[%c0_22, %c0_23], %51 {strides = array<i32>} : memref<32x8xf32, #tpu.memory_space<vmem>>, vector<32x8xf32>,
      %c0_24 = arith.constant 0 : index
      %c0_25 = arith.constant 0 : index
      %53 = vector.load %arg3[%c0_24, %c0_25] : memref<1x8xf32, #tpu.memory_space<vmem>>, vector<1x8xf32>
      %cst_26 = arith.constant dense<0.000000e+00> : vector<1x32xf32>
      %54 = tpu.matmul %53, %51, %cst_26 {dimension_numbers = #tpu.dot_dimension_numbers<[1], [1], [0], [0], [0, 0, 1, 0], [], []>} : vector<1x8xf32>, vector<32x8xf32>, vector<1x32xf32> -> vector<1x32xf32>
      %c0_27 = arith.constant 0 : index
      %c0_28 = arith.constant 0 : index
      %55 = vector.load %arg9[%c0_27, %c0_28] : memref<1x32xf32, #tpu.memory_space<vmem>>, vector<1x32xf32>
      tpu.vector_store %arg9[%c0_27, %c0_28], %54 {strides = array<i32>} : memref<1x32xf32, #tpu.memory_space<vmem>>, vector<1x32xf32>,
      %c0_29 = arith.constant 0 : index
      %c0_30 = arith.constant 0 : index
      %56 = vector.load %arg4[%c0_29, %c0_30] : memref<8x1xf32, #tpu.memory_space<vmem>>, vector<8x1xf32>
      %cst_31 = arith.constant dense<0.000000e+00> : vector<32x1xf32>
      %57 = tpu.matmul %51, %56, %cst_31 {dimension_numbers = #tpu.dot_dimension_numbers<[1], [0], [0], [1], [0, 0, 1, 1], [], []>} : vector<32x8xf32>, vector<8x1xf32>, vector<32x1xf32> -> vector<32x1xf32>
      %c0_32 = arith.constant 0 : index
      %c0_33 = arith.constant 0 : index
      %58 = vector.load %arg10[%c0_32, %c0_33] : memref<32x1xf32, #tpu.memory_space<vmem>>, vector<32x1xf32>
      tpu.vector_store %arg10[%c0_32, %c0_33], %57 {strides = array<i32>} : memref<32x1xf32, #tpu.memory_space<vmem>>, vector<32x1xf32>,
    } else {
    }
    %c32_i32 = arith.constant 32 : i32
    %3 = arith.muli %arg0, %c32_i32 : i32
    %4 = tpu.assume_multiple %3, 32 : i32
    %c0 = arith.constant 0 : index
    %c0_1 = arith.constant 0 : index
    %5 = vector.load %arg6[%c0, %c0_1] : memref<32x32xi8, #tpu.memory_space<vmem>>, vector<32x32xi8>
    %c0_i8 = arith.constant 0 : i8
    %6 = vector.broadcast %c0_i8 : i8 to vector<32x32xi8>
    %7 = arith.cmpi ne, %5, %6 : vector<32x32xi8>
    %c0_2 = arith.constant 0 : index
    %c0_3 = arith.constant 0 : index
    %8 = vector.load %arg8[%c0_2, %c0_3] : memref<32x8xf32, #tpu.memory_space<vmem>>, vector<32x8xf32>
    %c0_4 = arith.constant 0 : index
    %c0_5 = arith.constant 0 : index
    %9 = vector.load %arg9[%c0_4, %c0_5] : memref<1x32xf32, #tpu.memory_space<vmem>>, vector<1x32xf32>
    %10 = arith.index_cast %4 : i32 to index
    %c0_6 = arith.constant 0 : index
    %11 = vector.load %arg10[%10, %c0_6] : memref<32x1xf32, #tpu.memory_space<vmem>>, vector<32x1xf32>
    %12 = vector.broadcast %11 : vector<32x1xf32> to vector<32x32xf32>
    %13 = vector.broadcast %9 : vector<1x32xf32> to vector<32x32xf32>
    %14 = arith.addf %12, %13 : vector<32x32xf32>
    %cst = arith.constant 2.000000e-01 : f32
    %15 = vector.broadcast %cst : f32 to vector<32x32xf32>
    %16 = arith.mulf %15, %14 : vector<32x32xf32>
    %17 = arith.maximumf %14, %16 : vector<32x32xf32>
    %cst_7 = arith.constant -1.000000e+30 : f32
    %18 = vector.broadcast %cst_7 : f32 to vector<32x32xf32>
    %19 = arith.select %7, %17, %18 : vector<32x32xi1>, vector<32x32xf32>
    %cst_8 = arith.constant dense<0xFF800000> : vector<32xf32>
    %20 = vector.multi_reduction <maximumf>, %19, %cst_8 [1] : vector<32x32xf32> to vector<32xf32>
    %21 = vector.shape_cast %20 : vector<32xf32> to vector<32x1xf32>
    %22 = vector.broadcast %21 : vector<32x1xf32> to vector<32x32xf32>
    %23 = arith.subf %19, %22 : vector<32x32xf32>
    %24 = math.exp %23 : vector<32x32xf32>
    %cst_9 = arith.constant dense<0.000000e+00> : vector<32xf32>
    %25 = vector.multi_reduction <add>, %24, %cst_9 [1] : vector<32x32xf32> to vector<32xf32>
    %26 = vector.shape_cast %25 : vector<32xf32> to vector<32x1xf32>
    %27 = arith.truncf %24 : vector<32x32xf32> to vector<32x32xbf16>
    %28 = arith.truncf %8 : vector<32x8xf32> to vector<32x8xbf16>
    %cst_10 = arith.constant dense<0.000000e+00> : vector<32x8xf32>
    %29 = tpu.matmul %27, %28, %cst_10 {dimension_numbers = #tpu.dot_dimension_numbers<[1], [0], [0], [1], [0, 0, 1, 1], [], []>} : vector<32x32xbf16>, vector<32x8xbf16>, vector<32x8xf32> -> vector<32x8xf32>
    %30 = tpu.reciprocal %26 {approx = true} : vector<32x1xf32> -> vector<32x1xf32>
    %31 = vector.broadcast %30 : vector<32x1xf32> to vector<32x8xf32>
    %32 = arith.mulf %29, %31 : vector<32x8xf32>
    %c0_11 = arith.constant 0 : index
    %c0_12 = arith.constant 0 : index
    %33 = vector.load %arg5[%c0_11, %c0_12] : memref<1x8xf32, #tpu.memory_space<vmem>>, vector<1x8xf32>
    %34 = vector.broadcast %33 : vector<1x8xf32> to vector<32x8xf32>
    %35 = arith.addf %32, %34 : vector<32x8xf32>
    %cst_13 = arith.constant dense<0xFF800000> : vector<32xf32>
    %36 = vector.multi_reduction <maximumf>, %35, %cst_13 [1] : vector<32x8xf32> to vector<32xf32>
    %37 = vector.shape_cast %36 : vector<32xf32> to vector<32x1xf32>
    %38 = vector.broadcast %37 : vector<32x1xf32> to vector<32x8xf32>
    %39 = arith.subf %35, %38 : vector<32x8xf32>
    %40 = math.exp %39 : vector<32x8xf32>
    %cst_14 = arith.constant dense<0.000000e+00> : vector<32xf32>
    %41 = vector.multi_reduction <add>, %40, %cst_14 [1] : vector<32x8xf32> to vector<32xf32>
    %42 = vector.shape_cast %41 : vector<32xf32> to vector<32x1xf32>
    %43 = math.log %42 : vector<32x1xf32>
    %44 = vector.broadcast %43 : vector<32x1xf32> to vector<32x8xf32>
    %45 = arith.subf %39, %44 : vector<32x8xf32>
    %c0_15 = arith.constant 0 : index
    %c0_16 = arith.constant 0 : index
    %46 = vector.load %arg7[%c0_15, %c0_16] : memref<32x8xf32, #tpu.memory_space<vmem>>, vector<32x8xf32>
    tpu.vector_store %arg7[%c0_15, %c0_16], %45 {strides = array<i32>} : memref<32x8xf32, #tpu.memory_space<vmem>>, vector<32x8xf32>,
    return
  }
  func.func @transform_0(%arg0: i32) -> (i32, i32) {
    %c0_i32 = arith.constant 0 : i32
    %c0_i32_0 = arith.constant 0 : i32
    %c0_i32_1 = arith.constant 0 : i32
    return %c0_i32, %c0_i32_0 : i32, i32
  }
  func.func @transform_1(%arg0: i32) -> (i32, i32) {
    %c0_i32 = arith.constant 0 : i32
    %c0_i32_0 = arith.constant 0 : i32
    %c0_i32_1 = arith.constant 0 : i32
    return %c0_i32, %c0_i32_0 : i32, i32
  }
  func.func @transform_2(%arg0: i32) -> (i32, i32) {
    %c0_i32 = arith.constant 0 : i32
    %c0_i32_0 = arith.constant 0 : i32
    %c0_i32_1 = arith.constant 0 : i32
    return %c0_i32, %c0_i32_0 : i32, i32
  }
  func.func @transform_3(%arg0: i32) -> (i32, i32) {
    %c0_i32 = arith.constant 0 : i32
    %c0_i32_0 = arith.constant 0 : i32
    %c0_i32_1 = arith.constant 0 : i32
    return %c0_i32, %c0_i32_0 : i32, i32
  }
  func.func @transform_4(%arg0: i32) -> (i32, i32) {
    %c0_i32 = arith.constant 0 : i32
    %c0_i32_0 = arith.constant 0 : i32
    %c0_i32_1 = arith.constant 0 : i32
    return %c0_i32, %c0_i32_0 : i32, i32
  }
  func.func @transform_5(%arg0: i32) -> (i32, i32) {
    %c0_i32 = arith.constant 0 : i32
    %c0_i32_0 = arith.constant 0 : i32
    return %arg0, %c0_i32 : i32, i32
  }
  func.func @transform_6(%arg0: i32) -> (i32, i32) {
    %c0_i32 = arith.constant 0 : i32
    %c0_i32_0 = arith.constant 0 : i32
    return %arg0, %c0_i32 : i32, i32
  }
}

</mosaic_0001>

<bundles_post_ra>
// kernel: gat_forward.3
= control target key start
LH: loop header
LB: loop body
LE: loop exit
PB: predicated region body
PF: predicated region fallthrough
CT: control target
= control target key end

     0   :  { %vm48_vm0 = vcmask 523264   ;;  %v664_v18 = vmov 0.0|0.0   ;;  %vm665_vm1 = vmmov 0   ;;  %v666_v19 = vmov 0.0   ;;  %s798_s1 = inlined_call_operand.vmem [shape: f32[64,8], index: 1, kind: input, shape index: {}]   ;;  %s799_s0 = inlined_call_operand.vmem [shape: f32[32,64], index: 0, kind: input, shape index: {}]   ;;  %s800_s3 = inlined_call_operand.vmem [shape: f32[8,1], index: 3, kind: input, shape index: {}]   ;;  %s801_s2 = inlined_call_operand.vmem [shape: f32[1,8], index: 2, kind: input, shape index: {}]   ;;  %s802_s5 = inlined_call_operand.vmem [shape: s8[32,32], index: 5, kind: input, shape index: {}]   ;;  %s803_s4 = inlined_call_operand.vmem [shape: f32[1,8], index: 4, kind: input, shape index: {}]   ;;  %s804_s6 = inlined_call_operand.vmem [shape: f32[32,8], index: 6, kind: output, shape index: {}]  }
   0x1   :  { %v34_v0 = vld [vmem:[%s798_s1] sm:$0xff]  ;;  %v35_v1 = vld [vmem:[%s798_s1 + $0x8] sm:$0xff]  ;;  %v36_v2 = vld [vmem:[%s798_s1 + $0x10] sm:$0xff]  ;;  %618 = vmatprep.subr.bf16.mxu1 %v664_v18  ;;  %599 = vmatprep.mubr.msk.f32.mxu1 %vm665_vm1, %v666_v19  ;;  %vm104_vm2 = vcmask 64512   ;;  %v667_v34 = vmov 0   ;;  %vm195_vm4 = vcmask 253952  }
   0x2   :  { %v44_v3 = vpack.c.bf16 %v35_v1, %v34_v0  ;;  %v37_v4 = vld [vmem:[%s798_s1 + $0x18] sm:$0xff]  ;;  %v38_v6 = vld [vmem:[%s798_s1 + $0x20] sm:$0xff]  ;;  %v39_v7 = vld [vmem:[%s798_s1 + $0x28] sm:$0xff]  ;;  %630 = vset.pattern.permute.xlu0 %v667_v34  ;;  %631 = vset.pattern.permute.xlu1 %v667_v34  ;;  %vm283_vm5 = vcmask 7168   ;;  %vm372_vm12 = vcmask 261120  }
   0x3   :  { %v45_v5 = vpack.c.bf16 %v37_v4, %v36_v2  ;;  %v30_v8 = vld [vmem:[%s799_s0] sm:$0xff]  ;;  %v31_v9 = vld [vmem:[%s799_s0 + $0x8] sm:$0xff]  ;;  %v46_v11 = vpack.c.bf16 %v39_v7, %v38_v6  ;;  %v40_v12 = vld [vmem:[%s798_s1 + $0x30] sm:$0xff] }
   0x4   :  { %579 = vmatprep.subr.bf16.mxu0 %v44_v3  ;;  %v42_v10 = vpack.c.bf16 %v31_v9, %v30_v8  ;;  %v41_v13 = vld [vmem:[%s798_s1 + $0x38] sm:$0xff]  ;;  %v32_v15 = vld [vmem:[%s799_s0 + $0x10] sm:$0xff]  ;;  %vm620_vm3 = vmpackc.low %vm104_vm2, %vm104_vm2 }
   0x5   :  { %580 = vmatpush3.bf16.msra.mxu0 %v44_v3  ;;  %v47_v14 = vpack.c.bf16 %v41_v13, %v40_v12  ;;  %v33_v16 = vld [vmem:[%s799_s0 + $0x18] sm:$0xff]  ;;  %v197_v30 = vld [vmem:[%s800_s3] sm:$0xff] }
   0x6   :  { %581 = vmatprep.subr.bf16.mxu0 %v45_v5  ;;  %587 = vmatprep.mubr.msk.bf16.mxu0 %vm48_vm0, %v42_v10  ;;  %v43_v17 = vpack.c.bf16 %v33_v16, %v32_v15  ;;  %v109_v33 = vld [vmem:[%s801_s2] sm:$0x1] }
   0x7   :  { %v289_v45 = vld [vmem:[%s802_s5] sm:$0xff] }
   0x8   :  { %vm290_vm6 = vnez %v289_v45 }
   0x9   :  { %582 = vmatpush3.bf16.msra.mxu0 %v45_v5  ;;  %v339_v46 = vsel %vm290_vm6, 16843009, %v667_v34 }
   0xa   :  { %583 = vmatprep.subr.bf16.mxu0 %v46_v11  ;;  %v340_v47 = vunpack.c.0.s8 %v339_v46  ;;  %v341_v49 = vunpack.c.1.s8 %v339_v46  ;;  %v342_v50 = vunpack.c.2.s8 %v339_v46  ;;  %v343_v54 = vunpack.c.3.s8 %v339_v46 }
   0xc   :  { %v344_v48 = vpack.c.b16 %v340_v47, %v340_v47  ;;  %v346_v52 = vpack.c.b16 %v341_v49, %v341_v49  ;;  %v348_v53 = vpack.c.b16 %v342_v50, %v342_v50  ;;  %v350_v57 = vpack.c.b16 %v343_v54, %v343_v54 }
   0xd   :  { %584 = vmatpush3.bf16.msra.mxu0 %v46_v11 }
   0xe   :  { %585 = vmatprep.subr.bf16.mxu0 %v47_v14  ;;  %v345_v51 = vpack.c.b8 %v344_v48, %v344_v48  ;;  %v347_v55 = vpack.c.b8 %v346_v52, %v346_v52  ;;  %v349_v56 = vpack.c.b8 %v348_v53, %v348_v53  ;;  %v351_v59 = vpack.c.b8 %v350_v57, %v350_v57 }
  0x10   :  { %vm352_vm7 = vnez %v345_v51  ;;  %vm353_vm8 = vnez %v347_v55  ;;  %vm354_vm9 = vnez %v349_v56  ;;  %vm355_vm10 = vnez %v351_v59 }
  0x11   :  { %586 = vmatpush3.bf16.msra.mxu0 %v47_v14  ;;  %v356_v58 = vsel %vm352_vm7, 16843009, %v667_v34  ;;  %v357_v0 = vsel %vm353_vm8, 16843009, %v667_v34  ;;  %v358_v1 = vsel %vm354_vm9, 16843009, %v667_v34 }
  0x12   :  { %v360_v62 = vunpack.c.0.s8 %v356_v58  ;;  %v361_v5 = vunpack.c.0.s8 %v357_v0  ;;  %v362_v6 = vunpack.c.0.s8 %v358_v1  ;;  %v359_v10 = vsel %vm355_vm10, 16843009, %v667_v34  ;;  %v558_v58 = vld [vmem:[%s803_s4] ss:$0 sm:$0xff] }
  0x13   :  { %v363_v16 = vunpack.c.0.s8 %v359_v10 }
  0x14   :  { %588 = vmatmul.mubr.msk.bf16.vlgmr.msra.gmra.mrb[0].mxu0 %vm48_vm0, %v43_v17  ;;  %vm364_vm11 = vcmp.ne.s32.totalorder %v360_v62, 0  ;;  %vm365_vm13 = vcmp.ne.s32.totalorder %v361_v5, 0  ;;  %vm366_vm14 = vcmp.ne.s32.totalorder %v362_v6, 0 }
  0x15   :  { %vm367_vm15 = vcmp.ne.s32.totalorder %v363_v16, 0 }
  0xe7   :  { %v589_v20 = vpop.f32.mrb[0].mxu0 }
  0xe8   :  { %107 = vst.msk [vmem:[#allocation2 + $0x10] sm:$0xff] %vm104_vm2, %v589_v20  ;;  %v89_v21 = vpop.f32.mrb[1].mxu0 }
  0xe9   :  { %105 = vst.msk [vmem:[#allocation2] sm:$0xff] %vm104_vm2, %v89_v21  ;;  %v590_v22 = vpop.f32.mrb[2].mxu0 }
  0xea   :  { %108 = vst.msk [vmem:[#allocation2 + $0x18] sm:$0xff] %vm104_vm2, %v590_v22  ;;  %v623_v23 = vpack.c.bf16 %v590_v22, %v589_v20  ;;  %v92_v24 = vpop.f32.mrb[3].mxu0 }
  0xeb   :  { %106 = vst.msk [vmem:[#allocation2 + $0x8] sm:$0xff] %vm104_vm2, %v92_v24  ;;  %v619_v25 = vpack.c.bf16 %v92_v24, %v89_v21 }
  0xed   :  { %621 = vmatpush3.bf16.xpose.msk.msra.mxu1 %vm620_vm3, %v619_v25 }
  0xee   :  { %622 = vmatprep.subr.bf16.mxu1 %v664_v18 }
  0xef   :  { %v293_v31 = vld [vmem:[#allocation2 + $0x10] sm:$0xff] }
  0xf0   :  { %v291_v26 = vld [vmem:[#allocation2] sm:$0xff] }
  0xf1   :  { %v294_v28 = vld [vmem:[#allocation2 + $0x18] sm:$0xff] }
  0xf2   :  { %v292_v27 = vld [vmem:[#allocation2 + $0x8] sm:$0xff]  ;;  %v412_v32 = vpack.c.bf16 %v294_v28, %v293_v31 }
  0xf3   :  { %v411_v29 = vpack.c.bf16 %v292_v27, %v291_v26 }
  0xf5   :  { %625 = vmatpush3.bf16.xpose.msk.msra.mxu1 %vm620_vm3, %v623_v23  ;;  %610 = vmatprep.subr.bf16.mxu0 %v411_v29 }
  0xf6   :  { %611 = vmatpush3.bf16.msra.mxu0 %v411_v29  ;;  %602 = vmatprep.subr.mxu1 %v197_v30 }
  0xf7   :  { %612 = vmatprep.subr.bf16.mxu0 %v412_v32 }
  0xfa   :  { %613 = vmatpush3.bf16.msra.mxu0 %v412_v32 }
  0xfc   :  { %600 = vmatmul.mubr.msk.f32.vlgmr.msra.gmra.mrb[0].mxu1 %vm104_vm2, %v109_v33 }
  0xfd   :  { %603 = vmatpush3.msra.mxu1 %v197_v30  ;;  %604 = vmatprep.mubr.msk.f32.mxu1 %vm104_vm2, %v89_v21 }
 0x100   :  { %605 = vmatmul.mubr.msk.f32.vlgmr.msra.gmra.mrb[2].mxu1 %vm104_vm2, %v92_v24 }
 0x101   :  { %607 = vmatprep.mubr.msk.f32.mxu1 %vm104_vm2, %v589_v20 }
 0x104   :  { %608 = vmatmul.mubr.msk.f32.gmra.mrb[4].mxu1 %vm104_vm2, %v590_v22 }
 0x1cf   :  { %v191_v35 = vpop.f32.mrb[0].mxu1 }
 0x1d0   :  { %196 = vst.msk [vmem:[#allocation3] sm:$0x1] %vm195_vm4, %v191_v35  ;;  %v601_v36 = vpop.f32.mrb[1].mxu1 }
 0x1d3   :  { %v606_v37 = vpop.f32.mrb[2].mxu1 }
 0x1d4   :  { %285 = vst.msk [vmem:[#allocation4 + $0x8] sm:$0xff] %vm283_vm5, %v606_v37  ;;  %v264_v38 = vpop.f32.mrb[3].mxu1 }
 0x1d5   :  { %284 = vst.msk [vmem:[#allocation4] sm:$0xff] %vm283_vm5, %v264_v38 }
 0x1d7   :  { %v609_v39 = vpop.f32.mrb[4].mxu1  ;;  %v555_v60 = vld [vmem:[#allocation3] ss:$0 sm:$0xff] }
 0x1d8   :  { %287 = vst.msk [vmem:[#allocation4 + $0x18] sm:$0xff] %vm283_vm5, %v609_v39  ;;  %v274_v40 = vpop.f32.mrb[5].mxu1 }
 0x1d9   :  { %286 = vst.msk [vmem:[#allocation4 + $0x10] sm:$0xff] %vm283_vm5, %v274_v40 }
 0x1db   :  { %v298_v42 = vld [vmem:[#allocation4 + $0x8] sm:$0xff] }
 0x1dc   :  { %v297_v41 = vld [vmem:[#allocation4] sm:$0xff] }
 0x1dd   :  { %303 = vperm.xlu0 %630, %v297_v41  }
 0x1df   :  { %v300_v44 = vld [vmem:[#allocation4 + $0x18] sm:$0xff] }
 0x1e0   :  { %v299_v43 = vld [vmem:[#allocation4 + $0x10] sm:$0xff] }
 0x1e1   :  { %308 = vperm.xlu0 %630, %v298_v42   ;;  %313 = vperm.xlu1 %631, %v299_v43  }
 0x1e5   :  { %318 = vperm.xlu1 %631, %v300_v44  }
 0x25c   :  { %v304_v61 = vpop.permute.xlu0 %303 }
 0x25d   :  { %v327_v63 = vadd.f32 %v555_v60, %v304_v61 }
 0x25f   :  { %v331_v2 = vmul.f32 0.2, %v327_v63 }
 0x260   :  { %v309_v3 = vpop.permute.xlu0 %308  ;;  %v314_v4 = vpop.permute.xlu1 %313 }
 0x261   :  { %v335_v7 = vmax.f32 %v327_v63, %v331_v2  ;;  %v328_v8 = vadd.f32 %v555_v60, %v309_v3  ;;  %v329_v9 = vadd.f32 %v555_v60, %v314_v4 }
 0x263   :  { %v332_v11 = vmul.f32 0.2, %v328_v8  ;;  %v333_v12 = vmul.f32 0.2, %v329_v9  ;;  %v368_v13 = vsel %vm364_vm11, %v335_v7, -1e+30 }
 0x264   :  { %v319_v14 = vpop.permute.xlu1 %318  ;;  %v373_v15 = vsel %vm372_vm12, %v368_v13, -inf }
 0x265   :  { %v336_v17 = vmax.f32 %v328_v8, %v332_v11  ;;  %v337_v18 = vmax.f32 %v329_v9, %v333_v12  ;;  %v330_v19 = vadd.f32 %v555_v60, %v319_v14  ;;  %374 = vmax.xlane.f32.xlu0 %v373_v15 }
 0x267   :  { %v334_v20 = vmul.f32 0.2, %v330_v19  ;;  %v369_v21 = vsel %vm365_vm13, %v336_v17, -1e+30  ;;  %v370_v22 = vsel %vm366_vm14, %v337_v18, -1e+30 }
 0x268   :  { %v376_v23 = vsel %vm372_vm12, %v369_v21, -inf  ;;  %v379_v24 = vsel %vm372_vm12, %v370_v22, -inf }
 0x269   :  { %v338_v25 = vmax.f32 %v330_v19, %v334_v20  ;;  %377 = vmax.xlane.f32.xlu1 %v376_v23  ;;  %380 = vmax.xlane.f32.xlu0 %v379_v24 }
 0x26b   :  { %v371_v26 = vsel %vm367_vm15, %v338_v25, -1e+30 }
 0x26c   :  { %v382_v27 = vsel %vm372_vm12, %v371_v26, -inf }
 0x26d   :  { %383 = vmax.xlane.f32.xlu0 %v382_v27 }
 0x2f2   :  { %v375_v28 = vpop.xlane.xlu0 %374 }
 0x2f3   :  { %v385_v29 = vsub.f32 %v368_v13, %v375_v28 }
 0x2f5   :  { %v389_v30 = vmul.f32 1.442695, %v385_v29 }
 0x2f6   :  { %v381_v31 = vpop.xlane.xlu0 %380  ;;  %v378_v32 = vpop.xlane.xlu1 %377 }
 0x2f7   :  { %632 = vpow2.f32 %v389_v30  ;;  %v387_v33 = vsub.f32 %v370_v22, %v381_v31  ;;  %v386_v34 = vsub.f32 %v369_v21, %v378_v32 }
 0x2f9   :  { %v393_v35 = vmul.f32 1.442695, %v387_v33  ;;  %v391_v36 = vmul.f32 1.442695, %v386_v34 }
 0x2fa   :  { %v384_v37 = vpop.xlane.xlu0 %383 }
 0x2fb   :  { %634 = vpow2.f32 %v393_v35  ;;  %v388_v38 = vsub.f32 %v371_v26, %v384_v37 }
 0x2fc   :  { %636 = vpow2.f32 %v391_v36 }
 0x2fd   :  { %v395_v39 = vmul.f32 1.442695, %v388_v38 }
 0x2ff   :  { %638 = vpow2.f32 %v395_v39 }
 0x301   :  { %v633_v40 = vpop.eup %632 }
 0x302   :  { %v397_v41 = vsel %vm372_vm12, %v633_v40, 0.0 }
 0x303   :  { %398 = vadd.xlane.f32.xlu1 %v397_v41 }
 0x305   :  { %v635_v42 = vpop.eup %634 }
 0x306   :  { %v637_v43 = vpop.eup %636  ;;  %v403_v44 = vsel %vm372_vm12, %v635_v42, 0.0 }
 0x307   :  { %404 = vadd.xlane.f32.xlu1 %v403_v44  ;;  %v400_v45 = vsel %vm372_vm12, %v637_v43, 0.0  ;;  %v409_v46 = vpack.c.bf16 %v637_v43, %v633_v40 }
 0x308   :  { %401 = vadd.xlane.f32.xlu0 %v400_v45 }
 0x309   :  { %v639_v47 = vpop.eup %638  ;;  %614 = vmatprep.mubr.msk.bf16.mxu0 %vm372_vm12, %v409_v46 }
 0x30a   :  { %v406_v48 = vsel %vm372_vm12, %v639_v47, 0.0  ;;  %v410_v49 = vpack.c.bf16 %v639_v47, %v635_v42 }
 0x30c   :  { %407 = vadd.xlane.f32.xlu0 %v406_v48  ;;  %615 = vmatmul.mubr.msk.bf16.vlgmr.msra.gmra.mrb[4].mxu0 %vm372_vm12, %v410_v49 }
 0x390   :  { %v399_v50 = vpop.xlane.xlu1 %398 }
 0x391   :  { %640 = vrcp.f32 %v399_v50 }
 0x394   :  { %v405_v52 = vpop.xlane.xlu1 %404 }
 0x395   :  { %v402_v51 = vpop.xlane.xlu0 %401  ;;  %642 = vrcp.f32 %v405_v52 }
 0x396   :  { %644 = vrcp.f32 %v402_v51 }
 0x399   :  { %v408_v53 = vpop.xlane.xlu0 %407 }
 0x39a   :  { %646 = vrcp.f32 %v408_v53 }
 0x39b   :  { %v641_v54 = vpop.eup %640 }
 0x39f   :  { %v643_v56 = vpop.eup %642 }
 0x3a0   :  { %v645_v59 = vpop.eup %644 }
 0x3a4   :  { %v647_v63 = vpop.eup %646 }
 0x3df   :  { %v616_v55 = vpop.f32.mrb[4].mxu0 }
 0x3e0   :  { %v453_v57 = vpop.f32.mrb[5].mxu0  ;;  %v474_v60 = vmul.f32 %v643_v56, %v616_v55 }
 0x3e1   :  { %v472_v61 = vmul.f32 %v641_v54, %v453_v57  ;;  %v617_v62 = vpop.f32.mrb[6].mxu0 }
 0x3e2   :  { %v456_v0 = vpop.f32.mrb[7].mxu0  ;;  %v475_v1 = vmul.f32 %v647_v63, %v617_v62  ;;  %v485_v6 = vadd.f32 %v558_v58, %v474_v60 }
 0x3e3   :  { %v473_v2 = vmul.f32 %v645_v59, %v456_v0  ;;  %v483_v3 = vadd.f32 %v558_v58, %v472_v61 }
 0x3e4   :  { %v486_v8 = vadd.f32 %v558_v58, %v475_v1  ;;  %v494_v9 = vsel %vm104_vm2, %v485_v6, -inf }
 0x3e5   :  { %v488_v4 = vsel %vm104_vm2, %v483_v3, -inf  ;;  %v484_v5 = vadd.f32 %v558_v58, %v473_v2 }
 0x3e6   :  { %489 = vmax.xlane.f32.xlu1 %v488_v4  ;;  %v497_v10 = vsel %vm104_vm2, %v486_v8, -inf }
 0x3e7   :  { %v491_v7 = vsel %vm104_vm2, %v484_v5, -inf }
 0x3e8   :  { %492 = vmax.xlane.f32.xlu0 %v491_v7 }
 0x3ea   :  { %495 = vmax.xlane.f32.xlu1 %v494_v9 }
 0x3ec   :  { %498 = vmax.xlane.f32.xlu0 %v497_v10 }
 0x473   :  { %v490_v11 = vpop.xlane.xlu1 %489 }
 0x474   :  { %v500_v12 = vsub.f32 %v483_v3, %v490_v11 }
 0x475   :  { %v493_v13 = vpop.xlane.xlu0 %492 }
 0x476   :  { %v504_v14 = vmul.f32 1.442695, %v500_v12  ;;  %v501_v15 = vsub.f32 %v484_v5, %v493_v13 }
 0x477   :  { %v496_v16 = vpop.xlane.xlu1 %495 }
 0x478   :  { %648 = vpow2.f32 %v504_v14  ;;  %v506_v17 = vmul.f32 1.442695, %v501_v15  ;;  %v502_v18 = vsub.f32 %v485_v6, %v496_v16 }
 0x479   :  { %v499_v19 = vpop.xlane.xlu0 %498 }
 0x47a   :  { %650 = vpow2.f32 %v506_v17  ;;  %v508_v20 = vmul.f32 1.442695, %v502_v18  ;;  %v503_v21 = vsub.f32 %v486_v8, %v499_v19 }
 0x47c   :  { %652 = vpow2.f32 %v508_v20  ;;  %v510_v22 = vmul.f32 1.442695, %v503_v21 }
 0x47e   :  { %654 = vpow2.f32 %v510_v22 }
 0x482   :  { %v649_v23 = vpop.eup %648 }
 0x483   :  { %v512_v24 = vsel %vm104_vm2, %v649_v23, 0.0 }
 0x484   :  { %v651_v25 = vpop.eup %650  ;;  %513 = vadd.xlane.f32.xlu1 %v512_v24 }
 0x485   :  { %v515_v26 = vsel %vm104_vm2, %v651_v25, 0.0 }
 0x486   :  { %v653_v27 = vpop.eup %652  ;;  %516 = vadd.xlane.f32.xlu0 %v515_v26 }
 0x487   :  { %v518_v28 = vsel %vm104_vm2, %v653_v27, 0.0 }
 0x488   :  { %v655_v29 = vpop.eup %654  ;;  %519 = vadd.xlane.f32.xlu1 %v518_v28 }
 0x489   :  { %v521_v30 = vsel %vm104_vm2, %v655_v29, 0.0 }
 0x48a   :  { %522 = vadd.xlane.f32.xlu0 %v521_v30 }
 0x511   :  { %v514_v31 = vpop.xlane.xlu1 %513 }
 0x512   :  { %656 = vlog2.f32 %v514_v31 }
 0x513   :  { %v517_v32 = vpop.xlane.xlu0 %516 }
 0x514   :  { %658 = vlog2.f32 %v517_v32 }
 0x515   :  { %v520_v33 = vpop.xlane.xlu1 %519 }
 0x516   :  { %660 = vlog2.f32 %v520_v33 }
 0x517   :  { %v523_v34 = vpop.xlane.xlu0 %522 }
 0x518   :  { %662 = vlog2.f32 %v523_v34 }
 0x51c   :  { %v657_v35 = vpop.eup %656 }
 0x51d   :  { %v525_v36 = vmul.f32 0.6931472, %v657_v35 }
 0x51e   :  { %v659_v37 = vpop.eup %658 }
 0x51f   :  { %v532_v38 = vsub.f32 %v500_v12, %v525_v36  ;;  %v527_v39 = vmul.f32 0.6931472, %v659_v37 }
 0x520   :  { %v661_v40 = vpop.eup %660 }
 0x521   :  { %536 = vst.msk [vmem:[%s804_s6] sm:$0xff] %vm104_vm2, %v532_v38  ;;  %v533_v41 = vsub.f32 %v501_v15, %v527_v39  ;;  %v529_v42 = vmul.f32 0.6931472, %v661_v40 }
 0x522   :  { %v663_v43 = vpop.eup %662 }
 0x523   :  { %537 = vst.msk [vmem:[%s804_s6 + $0x8] sm:$0xff] %vm104_vm2, %v533_v41  ;;  %v534_v44 = vsub.f32 %v502_v18, %v529_v42  ;;  %v531_v45 = vmul.f32 0.6931472, %v663_v43 }
 0x525   :  { %538 = vst.msk [vmem:[%s804_s6 + $0x10] sm:$0xff] %vm104_vm2, %v534_v44  ;;  %v535_v46 = vsub.f32 %v503_v21, %v531_v45 }
 0x527   :  { %539 = vst.msk [vmem:[%s804_s6 + $0x18] sm:$0xff] %vm104_vm2, %v535_v46 }

// kernel: gat_forward.2
= control target key start
LH: loop header
LB: loop body
LE: loop exit
PB: predicated region body
PF: predicated region fallthrough
CT: control target
= control target key end

     0   :  { %vm42_vm0 = vcmask 261120   ;;  %v1271_v24 = vmov 0.0|0.0   ;;  %vm1272_vm1 = vmmov 0   ;;  %v1273_v25 = vmov 0.0   ;;  %s1279_s28 = smov 80   ;;  %s1280_s29 = smov 96   ;;  %s1656_s1 = inlined_call_operand.vmem [shape: f32[32,64], index: 1, kind: input, shape index: {}]   ;;  %s1657_s0 = inlined_call_operand.vmem [shape: f32[32,32], index: 0, kind: input, shape index: {}]   ;;  %s1658_s3 = inlined_call_operand.vmem [shape: f32[64,4], index: 3, kind: input, shape index: {}]   ;;  %s1659_s2 = inlined_call_operand.vmem [shape: f32[4,64], index: 2, kind: input, shape index: {}]   ;;  %s1660_s5 = inlined_call_operand.vmem [shape: s8[32,32], index: 5, kind: input, shape index: {}]   ;;  %s1661_s4 = inlined_call_operand.vmem [shape: f32[1,64], index: 4, kind: input, shape index: {}]   ;;  %s1662_s6 = inlined_call_operand.vmem [shape: f32[32,64], index: 6, kind: output, shape index: {}]  }
   0x1   :  { %v34_v0 = vld [vmem:[%s1656_s1] sm:$0xff]  ;;  %v35_v1 = vld [vmem:[%s1656_s1 + $0x8] sm:$0xff]  ;;  %v36_v2 = vld [vmem:[%s1656_s1 + $0x10] sm:$0xff]  ;;  %1146 = vmatprep.subr.bf16.mxu1 %v1271_v24  ;;  %1089 = vmatprep.mubr.msk.f32.mxu1 %vm1272_vm1, %v1273_v25  ;;  %vm98_vm2 = vcmask 523264   ;;  %v1274_v39 = vmov 1   ;;  %v1275_v40 = vmov 0   ;;  %v322_v56 = vlaneseq }
   0x2   :  { %v40_v3 = vpack.c.bf16 %v35_v1, %v34_v0  ;;  %v37_v4 = vld [vmem:[%s1656_s1 + $0x18] sm:$0xff]  ;;  %v30_v5 = vld [vmem:[%s1657_s0] sm:$0xff]  ;;  %v31_v6 = vld [vmem:[%s1657_s0 + $0x8] sm:$0xff]  ;;  %1184 = vset.pattern.permute.xlu1 %v1274_v39  ;;  %1183 = vset.pattern.permute.xlu0 %v1275_v40  ;;  %vm284_vm4 = vcmask 31744   ;;  %v1276_v46 = vmov 3   ;;  %v1277_v47 = vmov 2  }
   0x3   :  { %v41_v7 = vpack.c.bf16 %v37_v4, %v36_v2  ;;  %v38_v8 = vpack.c.bf16 %v31_v6, %v30_v5  ;;  %v191_v9 = vld [vmem:[%s1658_s3] sm:$0xff]  ;;  %v192_v10 = vld [vmem:[%s1658_s3 + $0x8] sm:$0xff]  ;;  %v32_v11 = vld [vmem:[%s1657_s0 + $0x10] sm:$0xff]  ;;  %vm189_vm5 = vcmask 257024   ;;  %v323_v58 = vshrl.u32 %v322_v56, 7  ;;  %s1282_s8 = smov 32  }
   0x4   :  { %1073 = vmatprep.subr.bf16.mxu0 %v40_v3  ;;  %v33_v12 = vld [vmem:[%s1657_s0 + $0x18] sm:$0xff]  ;;  %v1154_v13 = vpack.c.bf16 %v192_v10, %v191_v9  ;;  %v193_v14 = vld [vmem:[%s1658_s3 + $0x10] sm:$0xff]  ;;  %v195_v18 = vld [vmem:[%s1658_s3 + $0x20] sm:$0xff]  ;;  %s1283_s9 = smov 48   ;;  %vm954_vm15 = vcmask 130048   ;;  %vm963_vm1 = vcmask 392192  }
   0x5   :  { %1074 = vmatpush3.bf16.msra.mxu0 %v40_v3  ;;  %1077 = vmatprep.mubr.msk.bf16.mxu0 %vm42_vm0, %v38_v8  ;;  %v194_v15 = vld [vmem:[%s1658_s3 + $0x18] sm:$0xff]  ;;  %v39_v16 = vpack.c.bf16 %v33_v12, %v32_v11  ;;  %v196_v19 = vld [vmem:[%s1658_s3 + $0x28] sm:$0xff]  ;;  %v197_v21 = vld [vmem:[%s1658_s3 + $0x30] sm:$0xff]  ;;  %v493_v61 = vsub.s32 1, %v323_v58  ;;  %v324_v62 = vsub.s32 0, %v323_v58  ;;  %v781_v5 = vsub.s32 3, %v323_v58 }
   0x6   :  { %1075 = vmatprep.subr.bf16.mxu0 %v41_v7  ;;  %v1158_v17 = vpack.c.bf16 %v194_v15, %v193_v14  ;;  %v1162_v20 = vpack.c.bf16 %v196_v19, %v195_v18  ;;  %v198_v22 = vld [vmem:[%s1658_s3 + $0x38] sm:$0xff]  ;;  %vm1148_vm3 = vmpackc.low %vm98_vm2, %vm98_vm2  ;;  %v103_v35 = vld [vmem:[%s1659_s2] sm:$0xf]  ;;  %s1278_s2 = smov 112   ;;  %v638_v6 = vsub.s32 2, %v323_v58 }
   0x7   :  { %v1166_v23 = vpack.c.bf16 %v198_v22, %v197_v21  ;;  %v290_v53 = vld [vmem:[%s1660_s5] sm:$0xff]  ;;  %s1281_s5 = smov 16  }
   0x8   :  { %vm291_vm6 = vnez %v290_v53 }
   0x9   :  { %1076 = vmatpush3.bf16.msra.mxu0 %v41_v7  ;;  %v338_v54 = vsel %vm291_vm6, 16843009, %v1275_v40 }
   0xa   :  { %1155 = vmatprep.subr.bf16.mxu0 %v1154_v13  ;;  %v340_v55 = vunpack.c.1.s8 %v338_v54  ;;  %v339_v60 = vunpack.c.0.s8 %v338_v54  ;;  %v342_v4 = vunpack.c.3.s8 %v338_v54 }
   0xc   :  { %1078 = vmatmul.mubr.msk.bf16.vlgmr.msra.gmra.mrb[0].mxu0 %vm42_vm0, %v39_v16  ;;  %v345_v57 = vpack.c.b16 %v340_v55, %v340_v55  ;;  %v343_v0 = vpack.c.b16 %v339_v60, %v339_v60 }
   0xd   :  { %1157 = vmatpush3.bf16.msra.mxu0 %v1154_v13  ;;  %v349_v13 = vpack.c.b16 %v342_v4, %v342_v4 }
   0xe   :  { %1159 = vmatprep.subr.bf16.mxu0 %v1158_v17  ;;  %v346_v59 = vpack.c.b8 %v345_v57, %v345_v57  ;;  %v344_v10 = vpack.c.b8 %v343_v0, %v343_v0 }
  0x10   :  { %vm352_vm7 = vnez %v346_v59  ;;  %vm351_vm9 = vnez %v344_v10 }
  0x11   :  { %1161 = vmatpush3.bf16.msra.mxu0 %v1158_v17  ;;  %v356_v3 = vsel %vm352_vm7, 16843009, %v1275_v40 }
  0x12   :  { %1163 = vmatprep.subr.bf16.mxu0 %v1162_v20  ;;  %v360_v9 = vunpack.c.0.s8 %v356_v3 }
  0x14   :  { %vm1416_vm8 = vcmp.ne.s32.totalorder %v360_v9, 0 }
  0x15   :  { %1165 = vmatpush3.bf16.msra.mxu0 %v1162_v20 }
  0x16   :  { %1167 = vmatprep.subr.bf16.mxu0 %v1166_v23 }
  0x19   :  { %1169 = vmatpush3.bf16.msra.mxu0 %v1166_v23  ;;  %v350_v23 = vpack.c.b8 %v349_v13, %v349_v13 }
  0x1b   :  { %vm354_vm10 = vnez %v350_v23 }
  0xdf   :  { %v1079_v26 = vpop.f32.mrb[0].mxu0 }
  0xe0   :  { %101 = vst.msk [vmem:[#allocation2 + $0x10] sm:$0xff] %vm98_vm2, %v1079_v26  ;;  %v83_v27 = vpop.f32.mrb[1].mxu0 }
  0xe1   :  { %99 = vst.msk [vmem:[#allocation2] sm:$0xff] %vm98_vm2, %v83_v27  ;;  %v1080_v28 = vpop.f32.mrb[2].mxu0  ;;  %1108 = vmatprep.mubr.msk.f32.mxu0 %vm98_vm2, %v83_v27 }
  0xe2   :  { %102 = vst.msk [vmem:[#allocation2 + $0x18] sm:$0xff] %vm98_vm2, %v1080_v28  ;;  %v1151_v29 = vpack.c.bf16 %v1080_v28, %v1079_v26  ;;  %v86_v30 = vpop.f32.mrb[3].mxu0 }
  0xe3   :  { %100 = vst.msk [vmem:[#allocation2 + $0x8] sm:$0xff] %vm98_vm2, %v86_v30  ;;  %v1147_v31 = vpack.c.bf16 %v86_v30, %v83_v27  ;;  %1109 = vmatmul.mubr.msk.f32.vlgmr.msra.gmra.mrb[4].mxu0 %vm98_vm2, %v86_v30 }
  0xe4   :  { %1111 = vmatprep.mubr.msk.f32.mxu0 %vm98_vm2, %v1079_v26 }
  0xe5   :  { %1149 = vmatpush3.bf16.xpose.msk.msra.mxu1 %vm1148_vm3, %v1147_v31 }
  0xe6   :  { %1150 = vmatprep.subr.bf16.mxu1 %v1271_v24 }
  0xe7   :  { %1112 = vmatmul.mubr.msk.f32.gmra.mrb[6].mxu0 %vm98_vm2, %v1080_v28  ;;  %v294_v37 = vld [vmem:[#allocation2 + $0x10] sm:$0xff]  ;;  %v355_v28 = vsel %vm351_vm9, 16843009, %v1275_v40 }
  0xe8   :  { %v292_v32 = vld [vmem:[#allocation2] sm:$0xff] }
  0xe9   :  { %v295_v36 = vld [vmem:[#allocation2 + $0x18] sm:$0xff] }
  0xea   :  { %v293_v33 = vld [vmem:[#allocation2 + $0x8] sm:$0xff]  ;;  %v1386_v38 = vpack.c.bf16 %v295_v36, %v294_v37 }
  0xeb   :  { %v1379_v34 = vpack.c.bf16 %v293_v33, %v292_v32 }
  0xed   :  { %1153 = vmatpush3.bf16.xpose.msk.msra.mxu1 %vm1148_vm3, %v1151_v29  ;;  %v341_v29 = vunpack.c.2.s8 %v338_v54 }
  0xee   :  { %1114 = vmatprep.subr.bf16.mxu1 %v1379_v34 }
  0xf4   :  { %1090 = vmatmul.mubr.msk.f32.vlgmr.msra.gmra.mrb[0].mxu1 %vm98_vm2, %v103_v35 }
  0xf5   :  { %1115 = vmatpush3.bf16.msra.mxu1 %v1379_v34 }
  0xf6   :  { %1116 = vmatprep.subr.bf16.mxu1 %v1386_v38 }
  0xf9   :  { %1117 = vmatpush3.bf16.msra.mxu1 %v1386_v38 }
 0x1b6   :  { %v1110_v41 = vpop.f32.mrb[4].mxu0 }
 0x1b7   :  { %286 = vst.msk [vmem:[#allocation4 + $0x8] sm:$0xff] %vm284_vm4, %v1110_v41  ;;  %v265_v42 = vpop.f32.mrb[5].mxu0  ;;  %v359_v41 = vunpack.c.0.s8 %v355_v28 }
 0x1b8   :  { %285 = vst.msk [vmem:[#allocation4] sm:$0xff] %vm284_vm4, %v265_v42  ;;  %v347_v42 = vpack.c.b16 %v341_v29, %v341_v29 }
 0x1b9   :  { %vm1448_vm11 = vcmp.ne.s32.totalorder %v359_v41, 0 }
 0x1ba   :  { %v1113_v43 = vpop.f32.mrb[6].mxu0  ;;  %v348_v54 = vpack.c.b8 %v347_v42, %v347_v42 }
 0x1bb   :  { %288 = vst.msk [vmem:[#allocation4 + $0x18] sm:$0xff] %vm284_vm4, %v1113_v43  ;;  %v275_v44 = vpop.f32.mrb[7].mxu0 }
 0x1bc   :  { %287 = vst.msk [vmem:[#allocation4 + $0x10] sm:$0xff] %vm284_vm4, %v275_v44  ;;  %vm353_vm13 = vnez %v348_v54 }
 0x1be   :  { %v299_v45 = vld [vmem:[#allocation4 + $0x8] sm:$0xff] }
 0x1bf   :  { %480 = vperm.xlu1 %1184, %v299_v45   ;;  %309 = vperm.xlu0 %1183, %v299_v45   ;;  %v298_v49 = vld [vmem:[#allocation4] sm:$0xff] }
 0x1c2   :  { %v301_v51 = vld [vmem:[#allocation4 + $0x18] sm:$0xff] }
 0x1c3   :  { %1186 = vset.pattern.permute.xlu1 %v1276_v46  ;;  %1185 = vset.pattern.permute.xlu0 %v1277_v47  ;;  %v300_v52 = vld [vmem:[#allocation4 + $0x10] sm:$0xff] }
 0x1c4   :  { %768 = vperm.xlu1 %1186, %v299_v45   ;;  %625 = vperm.xlu0 %1185, %v299_v45   ;;  %v358_v45 = vsel %vm354_vm10, 16843009, %v1275_v40 }
 0x1c5   :  { %v362_v53 = vunpack.c.0.s8 %v358_v45 }
 0x1c7   :  { %v185_v48 = vpop.f32.mrb[0].mxu1  ;;  %vm1460_vm12 = vcmp.ne.s32.totalorder %v362_v53, 0 }
 0x1c8   :  { %1189 = vset.pattern.permute.xlu1 %v1277_v47  ;;  %1187 = vset.pattern.permute.xlu0 %v1275_v40  ;;  %190 = vst.msk [vmem:[#allocation3] sm:$0xf] %vm189_vm5, %v185_v48  ;;  %v1091_v50 = vpop.f32.mrb[1].mxu1 }
 0x1c9   :  { %621 = vperm.xlu1 %1189, %v298_v49   ;;  %304 = vperm.xlu0 %1187, %v298_v49  }
 0x1cd   :  { %1191 = vset.pattern.permute.xlu1 %v1275_v40  ;;  %1188 = vset.pattern.permute.xlu0 %v1274_v39 }
 0x1ce   :  { %476 = vperm.xlu0 %1188, %v298_v49   ;;  %319 = vperm.xlu1 %1191, %v301_v51  }
 0x1cf   :  { %v296_v63 = vld [vmem:[#allocation3] sm:$0xf] }
 0x1d0   :  { %v1405_v1 = vrot.slane %v296_v63, %v493_v61  ;;  %v1407_v2 = vrot.slane %v296_v63, %v324_v62  ;;  %v1412_v14 = vrot.slane %v296_v63, %v781_v5  ;;  %v1414_v15 = vrot.slane %v296_v63, %v638_v6 }
 0x1d2   :  { %1190 = vset.pattern.permute.xlu0 %v1276_v46  ;;  %1193 = vset.pattern.permute.xlu1 %v1277_v47 }
 0x1d3   :  { %764 = vperm.xlu0 %1190, %v298_v49   ;;  %633 = vperm.xlu1 %1193, %v301_v51  }
 0x1d7   :  { %1192 = vset.pattern.permute.xlu0 %v1274_v39  ;;  %1194 = vset.pattern.permute.xlu1 %v1275_v40 }
 0x1d8   :  { %488 = vperm.xlu0 %1192, %v301_v51   ;;  %314 = vperm.xlu1 %1194, %v300_v52  }
 0x1dc   :  { %1198 = vset.pattern.permute.xlu0 %v1276_v46  ;;  %1195 = vset.pattern.permute.xlu1 %v1274_v39 }
 0x1dd   :  { %776 = vperm.xlu0 %1198, %v301_v51   ;;  %484 = vperm.xlu1 %1195, %v300_v52  }
 0x1e1   :  { %1196 = vset.pattern.permute.xlu1 %v1277_v47  ;;  %551 = vrot.lane.b32.xlu0 %v1379_v34, %s1278_s2 }
 0x1e2   :  { %629 = vperm.xlu1 %1196, %v300_v52  }
 0x1e5   :  { %837 = vrot.lane.b32.xlu0 %v1379_v34, %s1279_s28 }
 0x1e6   :  { %1197 = vset.pattern.permute.xlu1 %v1276_v46 }
 0x1e7   :  { %772 = vperm.xlu1 %1197, %v300_v52  }
 0x1eb   :  { %553 = vrot.lane.b32.xlu1 %v1386_v38, %s1278_s2 }
 0x1ef   :  { %694 = vrot.lane.b32.xlu1 %v1379_v34, %s1280_s29 }
 0x23e   :  { %v481_v7 = vpop.permute.xlu1 %480  ;;  %v310_v8 = vpop.permute.xlu0 %309 }
 0x23f   :  { %v496_v11 = vadd.f32 %v1405_v1, %v481_v7  ;;  %v327_v12 = vadd.f32 %v1407_v2, %v310_v8 }
 0x241   :  { %v500_v16 = vmul.f32 0.2, %v496_v11  ;;  %v331_v17 = vmul.f32 0.2, %v327_v12 }
 0x243   :  { %v504_v19 = vmax.f32 %v496_v11, %v500_v16  ;;  %v335_v20 = vmax.f32 %v327_v12, %v331_v17  ;;  %v769_v21 = vpop.permute.xlu1 %768  ;;  %v626_v22 = vpop.permute.xlu0 %625  ;;  %v357_v11 = vsel %vm353_vm13, 16843009, %v1275_v40 }
 0x244   :  { %v784_v24 = vadd.f32 %v1412_v14, %v769_v21  ;;  %v641_v25 = vadd.f32 %v1414_v15, %v626_v22  ;;  %v361_v21 = vunpack.c.0.s8 %v357_v11 }
 0x245   :  { %v1424_v26 = vsel %vm1416_vm8, %v504_v19, -1e+30  ;;  %v1428_v27 = vsel %vm1416_vm8, %v335_v20, -1e+30 }
 0x246   :  { %v788_v30 = vmul.f32 0.2, %v784_v24  ;;  %v645_v31 = vmul.f32 0.2, %v641_v25  ;;  %v514_v32 = vsel %vm42_vm0, %v1424_v26, -inf  ;;  %v375_v33 = vsel %vm42_vm0, %v1428_v27, -inf }
 0x247   :  { %515 = vmax.xlane.f32.xlu1 %v514_v32  ;;  %376 = vmax.xlane.f32.xlu0 %v375_v33  ;;  %vm1493_vm14 = vcmp.ne.s32.totalorder %v361_v21, 0 }
 0x248   :  { %v792_v34 = vmax.f32 %v784_v24, %v788_v30  ;;  %v649_v35 = vmax.f32 %v641_v25, %v645_v31  ;;  %v622_v36 = vpop.permute.xlu1 %621  ;;  %v305_v37 = vpop.permute.xlu0 %304 }
 0x249   :  { %v326_v39 = vadd.f32 %v1407_v2, %v305_v37  ;;  %v640_v43 = vadd.f32 %v1414_v15, %v622_v36 }
 0x24a   :  { %v1439_v44 = vsel %vm1416_vm8, %v649_v35, -1e+30  ;;  %v1446_v48 = vsel %vm1416_vm8, %v792_v34, -1e+30 }
 0x24b   :  { %v330_v46 = vmul.f32 0.2, %v326_v39  ;;  %v659_v47 = vsel %vm42_vm0, %v1439_v44, -inf  ;;  %v644_v55 = vmul.f32 0.2, %v640_v43  ;;  %v802_v58 = vsel %vm42_vm0, %v1446_v48, -inf }
 0x24c   :  { %660 = vmax.xlane.f32.xlu1 %v659_v47 }
 0x24d   :  { %v334_v49 = vmax.f32 %v326_v39, %v330_v46  ;;  %v477_v50 = vpop.permute.xlu0 %476  ;;  %v320_v51 = vpop.permute.xlu1 %319  ;;  %v648_v63 = vmax.f32 %v640_v43, %v644_v55 }
 0x24e   :  { %v495_v56 = vadd.f32 %v1405_v1, %v477_v50  ;;  %v329_v57 = vadd.f32 %v1407_v2, %v320_v51 }
 0x24f   :  { %v1458_v61 = vsel %vm1448_vm11, %v334_v49, -1e+30  ;;  %v1481_v16 = vsel %vm1448_vm11, %v648_v63, -1e+30 }
 0x250   :  { %v499_v59 = vmul.f32 0.2, %v495_v56  ;;  %v333_v60 = vmul.f32 0.2, %v329_v57  ;;  %803 = vmax.xlane.f32.xlu1 %v802_v58  ;;  %v372_v7 = vsel %vm42_vm0, %v1458_v61, -inf  ;;  %v656_v24 = vsel %vm42_vm0, %v1481_v16, -inf }
 0x252   :  { %v503_v0 = vmax.f32 %v495_v56, %v499_v59  ;;  %v337_v3 = vmax.f32 %v329_v57, %v333_v60  ;;  %v765_v4 = vpop.permute.xlu0 %764  ;;  %v634_v5 = vpop.permute.xlu1 %633 }
 0x253   :  { %v783_v6 = vadd.f32 %v1412_v14, %v765_v4  ;;  %v643_v8 = vadd.f32 %v1414_v15, %v634_v5 }
 0x254   :  { %373 = vmax.xlane.f32.xlu1 %v372_v7  ;;  %v1470_v9 = vsel %vm1448_vm11, %v503_v0, -1e+30  ;;  %v1474_v10 = vsel %vm1460_vm12, %v337_v3, -1e+30 }
 0x255   :  { %v787_v12 = vmul.f32 0.2, %v783_v6  ;;  %v511_v13 = vsel %vm42_vm0, %v1470_v9, -inf  ;;  %v381_v20 = vsel %vm42_vm0, %v1474_v10, -inf  ;;  %v647_v22 = vmul.f32 0.2, %v643_v8 }
 0x256   :  { %512 = vmax.xlane.f32.xlu0 %v511_v13 }
 0x257   :  { %v791_v17 = vmax.f32 %v783_v6, %v787_v12  ;;  %v489_v18 = vpop.permute.xlu0 %488  ;;  %v315_v19 = vpop.permute.xlu1 %314  ;;  %v651_v31 = vmax.f32 %v643_v8, %v647_v22 }
 0x258   :  { %v498_v23 = vadd.f32 %v1405_v1, %v489_v18  ;;  %v328_v40 = vadd.f32 %v1407_v2, %v315_v19  ;;  %382 = vmax.xlane.f32.xlu1 %v381_v20 }
 0x259   :  { %v1491_v29 = vsel %vm1448_vm11, %v791_v17, -1e+30 }
 0x25a   :  { %v502_v25 = vmul.f32 0.2, %v498_v23  ;;  %v332_v28 = vmul.f32 0.2, %v328_v40  ;;  %657 = vmax.xlane.f32.xlu0 %v656_v24  ;;  %v799_v37 = vsel %vm42_vm0, %v1491_v29, -inf }
 0x25c   :  { %v506_v32 = vmax.f32 %v498_v23, %v502_v25  ;;  %v336_v33 = vmax.f32 %v328_v40, %v332_v28  ;;  %v777_v34 = vpop.permute.xlu0 %776  ;;  %v485_v2 = vpop.permute.xlu1 %484 }
 0x25d   :  { %v786_v35 = vadd.f32 %v1412_v14, %v777_v34  ;;  %v497_v36 = vadd.f32 %v1405_v1, %v485_v2  ;;  %v1513_v1 = vsel %vm1460_vm12, %v651_v31, -1e+30 }
 0x25e   :  { %800 = vmax.xlane.f32.xlu0 %v799_v37  ;;  %v1503_v39 = vsel %vm1460_vm12, %v506_v32, -1e+30  ;;  %v1507_v41 = vsel %vm1493_vm14, %v336_v33, -1e+30  ;;  %v665_v53 = vsel %vm42_vm0, %v1513_v1, -inf }
 0x25f   :  { %v790_v42 = vmul.f32 0.2, %v786_v35  ;;  %v501_v43 = vmul.f32 0.2, %v497_v36  ;;  %v520_v45 = vsel %vm42_vm0, %v1503_v39, -inf  ;;  %v378_v51 = vsel %vm42_vm0, %v1507_v41, -inf }
 0x260   :  { %521 = vmax.xlane.f32.xlu1 %v520_v45  ;;  %v552_v46 = vpop.permute.xlu0 %551 }
 0x261   :  { %v794_v47 = vmax.f32 %v786_v35, %v790_v42  ;;  %v505_v49 = vmax.f32 %v497_v36, %v501_v43  ;;  %v630_v50 = vpop.permute.xlu1 %629  ;;  %1122 = vmatprep.subr.bf16.mxu0 %v552_v46 }
 0x262   :  { %v642_v52 = vadd.f32 %v1414_v15, %v630_v50  ;;  %379 = vmax.xlane.f32.xlu0 %v378_v51  ;;  %1123 = vmatpush3.bf16.msra.mxu0 %v552_v46 }
 0x263   :  { %v1522_v54 = vsel %vm1493_vm14, %v505_v49, -1e+30  ;;  %v1528_v57 = vsel %vm1460_vm12, %v794_v47, -1e+30 }
 0x264   :  { %v646_v55 = vmul.f32 0.2, %v642_v52  ;;  %666 = vmax.xlane.f32.xlu1 %v665_v53  ;;  %v517_v56 = vsel %vm42_vm0, %v1522_v54, -inf  ;;  %v808_v60 = vsel %vm42_vm0, %v1528_v57, -inf  ;;  %v1539_v5 = vpop.permute.xlu0 %837 }
 0x266   :  { %v650_v58 = vmax.f32 %v642_v52, %v646_v55  ;;  %v773_v15 = vpop.permute.xlu1 %772  ;;  %518 = vmax.xlane.f32.xlu0 %v517_v56 }
 0x267   :  { %v785_v59 = vadd.f32 %v1412_v14, %v773_v15 }
 0x268   :  { %809 = vmax.xlane.f32.xlu1 %v808_v60  ;;  %v1535_v63 = vsel %vm1493_vm14, %v650_v58, -1e+30 }
 0x269   :  { %v789_v0 = vmul.f32 0.2, %v785_v59  ;;  %v662_v3 = vsel %vm42_vm0, %v1535_v63, -inf }
 0x26a   :  { %v554_v62 = vpop.permute.xlu1 %553  ;;  %663 = vmax.xlane.f32.xlu0 %v662_v3 }
 0x26b   :  { %v793_v4 = vmax.f32 %v785_v59, %v789_v0  ;;  %1124 = vmatprep.subr.bf16.mxu0 %v554_v62 }
 0x26c   :  { %1125 = vmatpush3.bf16.msra.mxu0 %v554_v62 }
 0x26d   :  { %1138 = vmatprep.subr.bf16.mxu0 %v1539_v5  ;;  %v1544_v14 = vsel %vm1493_vm14, %v793_v4, -1e+30 }
 0x26e   :  { %v1546_v6 = vpop.permute.xlu1 %694  ;;  %v805_v7 = vsel %vm42_vm0, %v1544_v14, -inf }
 0x26f   :  { %806 = vmax.xlane.f32.xlu0 %v805_v7  ;;  %1130 = vmatprep.subr.bf16.mxu1 %v1546_v6 }
 0x279   :  { %696 = vrot.lane.b32.xlu1 %v1386_v38, %s1280_s29 }
 0x285   :  { %839 = vrot.lane.b32.xlu0 %v1386_v38, %s1279_s28 }
 0x2d4   :  { %v516_v8 = vpop.xlane.xlu1 %515  ;;  %v377_v17 = vpop.xlane.xlu0 %376 }
 0x2d5   :  { %v524_v11 = vsub.f32 %v1424_v26, %v516_v8  ;;  %v385_v20 = vsub.f32 %v1428_v27, %v377_v17 }
 0x2d7   :  { %v529_v12 = vmul.f32 1.442695, %v524_v11  ;;  %v390_v40 = vmul.f32 1.442695, %v385_v20 }
 0x2d9   :  { %1199 = vpow2.f32 %v529_v12  ;;  %v661_v13 = vpop.xlane.xlu1 %660 }
 0x2da   :  { %v669_v18 = vsub.f32 %v1439_v44, %v661_v13 }
 0x2dc   :  { %v674_v19 = vmul.f32 1.442695, %v669_v18 }
 0x2dd   :  { %v804_v21 = vpop.xlane.xlu1 %803 }
 0x2de   :  { %1201 = vpow2.f32 %v674_v19  ;;  %v812_v22 = vsub.f32 %v1446_v48, %v804_v21 }
 0x2e0   :  { %v817_v23 = vmul.f32 1.442695, %v812_v22 }
 0x2e1   :  { %v374_v24 = vpop.xlane.xlu1 %373 }
 0x2e2   :  { %1203 = vpow2.f32 %v817_v23  ;;  %v384_v38 = vsub.f32 %v1458_v61, %v374_v24 }
 0x2e3   :  { %v1200_v26 = vpop.eup %1199  ;;  %v513_v25 = vpop.xlane.xlu0 %512  ;;  %1205 = vpow2.f32 %v390_v40 }
 0x2e4   :  { %v388_v28 = vmul.f32 1.442695, %v384_v38  ;;  %v523_v30 = vsub.f32 %v1470_v9, %v513_v25  ;;  %v538_v44 = vsel %vm42_vm0, %v1200_v26, 0.0 }
 0x2e5   :  { %539 = vadd.xlane.f32.xlu0 %v538_v44  ;;  %v383_v48 = vpop.xlane.xlu1 %382 }
 0x2e6   :  { %1207 = vpow2.f32 %v388_v28  ;;  %v527_v27 = vmul.f32 1.442695, %v523_v30  ;;  %v387_v9 = vsub.f32 %v1474_v10, %v383_v48 }
 0x2e7   :  { %v658_v31 = vpop.xlane.xlu0 %657 }
 0x2e8   :  { %v1562_v32 = vpop.eup %1201  ;;  %1209 = vpow2.f32 %v527_v27  ;;  %v668_v33 = vsub.f32 %v1481_v16, %v658_v31  ;;  %v394_v46 = vmul.f32 1.442695, %v387_v9 }
 0x2e9   :  { %v683_v61 = vsel %vm42_vm0, %v1562_v32, 0.0 }
 0x2ea   :  { %v672_v34 = vmul.f32 1.442695, %v668_v33  ;;  %684 = vadd.xlane.f32.xlu1 %v683_v61 }
 0x2eb   :  { %v801_v2 = vpop.xlane.xlu0 %800 }
 0x2ec   :  { %v1568_v35 = vpop.eup %1203  ;;  %1211 = vpow2.f32 %v672_v34  ;;  %v811_v36 = vsub.f32 %v1491_v29, %v801_v2 }
 0x2ed   :  { %v522_v37 = vpop.xlane.xlu1 %521  ;;  %v826_v42 = vsel %vm42_vm0, %v1568_v35, 0.0  ;;  %v1574_v45 = vpop.eup %1205 }
 0x2ee   :  { %v815_v43 = vmul.f32 1.442695, %v811_v36  ;;  %v526_v16 = vsub.f32 %v1503_v39, %v522_v37  ;;  %827 = vadd.xlane.f32.xlu1 %v826_v42  ;;  %v399_v31 = vsel %vm42_vm0, %v1574_v45, 0.0 }
 0x2ef   :  { %v380_v47 = vpop.xlane.xlu0 %379 }
 0x2f0   :  { %v1576_v49 = vpop.eup %1207  ;;  %1213 = vpow2.f32 %v815_v43  ;;  %v533_v10 = vmul.f32 1.442695, %v526_v16  ;;  %v386_v50 = vsub.f32 %v1507_v41, %v380_v47 }
 0x2f1   :  { %v667_v51 = vpop.xlane.xlu1 %666  ;;  %v408_v29 = vpack.c.bf16 %v1574_v45, %v1576_v49  ;;  %v396_v61 = vsel %vm42_vm0, %v1576_v49, 0.0 }
 0x2f2   :  { %v1210_v52 = vpop.eup %1209  ;;  %1215 = vpow2.f32 %v533_v10  ;;  %v392_v53 = vmul.f32 1.442695, %v386_v50  ;;  %v671_v39 = vsub.f32 %v1513_v1, %v667_v51 }
 0x2f3   :  { %1217 = vpow2.f32 %v394_v46  ;;  %1118 = vmatprep.mubr.msk.bf16.mxu1 %vm42_vm0, %v408_v29  ;;  %v519_v55 = vpop.xlane.xlu0 %518  ;;  %v535_v56 = vsel %vm42_vm0, %v1210_v52, 0.0  ;;  %v547_v58 = vpack.c.bf16 %v1200_v26, %v1210_v52 }
 0x2f4   :  { %1219 = vpow2.f32 %v392_v53  ;;  %v678_v15 = vmul.f32 1.442695, %v671_v39  ;;  %v525_v41 = vsub.f32 %v1522_v54, %v519_v55  ;;  %536 = vadd.xlane.f32.xlu1 %v535_v56 }
 0x2f5   :  { %v810_v59 = vpop.xlane.xlu1 %809  ;;  %1126 = vmatprep.mubr.msk.bf16.mxu0 %vm42_vm0, %v547_v58 }
 0x2f6   :  { %v1212_v60 = vpop.eup %1211  ;;  %1221 = vpow2.f32 %v678_v15  ;;  %v531_v0 = vmul.f32 1.442695, %v525_v41  ;;  %v814_v1 = vsub.f32 %v1528_v57, %v810_v59 }
 0x2f7   :  { %v664_v3 = vpop.xlane.xlu0 %663  ;;  %v680_v62 = vsel %vm42_vm0, %v1212_v60, 0.0  ;;  %v692_v23 = vpack.c.bf16 %v1562_v32, %v1212_v60 }
 0x2f8   :  { %1223 = vpow2.f32 %v531_v0  ;;  %v821_v4 = vmul.f32 1.442695, %v814_v1  ;;  %v670_v7 = vsub.f32 %v1535_v63, %v664_v3  ;;  %681 = vadd.xlane.f32.xlu0 %v680_v62 }
 0x2f9   :  { %v697_v24 = vpop.permute.xlu1 %696 }
 0x2fa   :  { %v1214_v8 = vpop.eup %1213  ;;  %1225 = vpow2.f32 %v821_v4  ;;  %v676_v54 = vmul.f32 1.442695, %v670_v7 }
 0x2fb   :  { %v823_v11 = vsel %vm42_vm0, %v1214_v8, 0.0 }
 0x2fc   :  { %v1216_v12 = vpop.eup %1215  ;;  %1227 = vpow2.f32 %v676_v54  ;;  %824 = vadd.xlane.f32.xlu0 %v823_v11  ;;  %v807_v13 = vpop.xlane.xlu0 %806 }
 0x2fd   :  { %v1218_v17 = vpop.eup %1217  ;;  %v813_v57 = vsub.f32 %v1544_v14, %v807_v13  ;;  %v544_v18 = vsel %vm42_vm0, %v1216_v12, 0.0 }
 0x2fe   :  { %v1220_v19 = vpop.eup %1219  ;;  %545 = vadd.xlane.f32.xlu1 %v544_v18  ;;  %v405_v33 = vsel %vm42_vm0, %v1218_v17, 0.0 }
 0x2ff   :  { %v819_v20 = vmul.f32 1.442695, %v813_v57  ;;  %v409_v21 = vpack.c.bf16 %v1218_v17, %v1220_v19  ;;  %v402_v34 = vsel %vm42_vm0, %v1220_v19, 0.0 }
 0x300   :  { %v1222_v63 = vpop.eup %1221  ;;  %v840_v30 = vpop.permute.xlu0 %839 }
 0x301   :  { %1229 = vpow2.f32 %v819_v20  ;;  %1119 = vmatmul.mubr.msk.bf16.vlgmr.msra.gmra.mrb[4].mxu1 %vm42_vm0, %v409_v21  ;;  %v689_v22 = vsel %vm42_vm0, %v1222_v63, 0.0 }
 0x302   :  { %v1224_v40 = vpop.eup %1223  ;;  %1131 = vmatpush3.bf16.msra.mxu1 %v1546_v6  ;;  %690 = vadd.xlane.f32.xlu1 %v689_v22  ;;  %v835_v6 = vpack.c.bf16 %v1568_v35, %v1214_v8 }
 0x303   :  { %v548_v14 = vpack.c.bf16 %v1216_v12, %v1224_v40  ;;  %1132 = vmatprep.subr.bf16.mxu1 %v697_v24  ;;  %1134 = vmatprep.mubr.msk.bf16.mxu1 %vm42_vm0, %v692_v23  ;;  %v541_v38 = vsel %vm42_vm0, %v1224_v40, 0.0 }
 0x304   :  { %v1226_v26 = vpop.eup %1225  ;;  %542 = vadd.xlane.f32.xlu0 %v541_v38 }
 0x305   :  { %1127 = vmatmul.mubr.msk.bf16.vlgmr.msra.gmra.mrb[8].mxu0 %vm42_vm0, %v548_v14  ;;  %v832_v25 = vsel %vm42_vm0, %v1226_v26, 0.0 }
 0x306   :  { %v1228_v28 = vpop.eup %1227  ;;  %1133 = vmatpush3.bf16.msra.mxu1 %v697_v24  ;;  %1139 = vmatpush3.bf16.msra.mxu0 %v1539_v5 }
 0x307   :  { %833 = vadd.xlane.f32.xlu1 %v832_v25  ;;  %1140 = vmatprep.subr.bf16.mxu0 %v840_v30  ;;  %v686_v44 = vsel %vm42_vm0, %v1228_v28, 0.0  ;;  %v693_v27 = vpack.c.bf16 %v1222_v63, %v1228_v28 }
 0x308   :  { %1142 = vmatprep.mubr.msk.bf16.mxu0 %vm42_vm0, %v835_v6  ;;  %687 = vadd.xlane.f32.xlu0 %v686_v44 }
 0x309   :  { %1135 = vmatmul.mubr.msk.bf16.vlgmr.msra.gmra.mrb[8].mxu1 %vm42_vm0, %v693_v27 }
 0x30a   :  { %1141 = vmatpush3.bf16.msra.mxu0 %v840_v30 }
 0x30b   :  { %v1230_v32 = vpop.eup %1229  ;;  %400 = vadd.xlane.f32.xlu1 %v399_v31 }
 0x30c   :  { %v829_v5 = vsel %vm42_vm0, %v1230_v32, 0.0  ;;  %v836_v48 = vpack.c.bf16 %v1226_v26, %v1230_v32 }
 0x30d   :  { %830 = vadd.xlane.f32.xlu0 %v829_v5 }
 0x30e   :  { %1143 = vmatmul.mubr.msk.bf16.vlgmr.msra.gmra.mrb[12].mxu0 %vm42_vm0, %v836_v48 }
 0x30f   :  { %406 = vadd.xlane.f32.xlu1 %v405_v33 }
 0x311   :  { %397 = vadd.xlane.f32.xlu0 %v396_v61 }
 0x315   :  { %403 = vadd.xlane.f32.xlu0 %v402_v34 }
 0x372   :  { %v540_v9 = vpop.xlane.xlu0 %539 }
 0x377   :  { %v685_v2 = vpop.xlane.xlu1 %684 }
 0x37b   :  { %v828_v36 = vpop.xlane.xlu1 %827 }
 0x381   :  { %v537_v42 = vpop.xlane.xlu1 %536 }
 0x385   :  { %v682_v35 = vpop.xlane.xlu0 %681 }
 0x389   :  { %v825_v37 = vpop.xlane.xlu0 %824 }
 0x38b   :  { %v546_v16 = vpop.xlane.xlu1 %545 }
 0x38f   :  { %v691_v46 = vpop.xlane.xlu1 %690 }
 0x391   :  { %v543_v43 = vpop.xlane.xlu0 %542 }
 0x392   :  { %1231 = vrcp.f32 %v543_v43 }
 0x393   :  { %1233 = vrcp.f32 %v537_v42  ;;  %v1031_v42 = vld [vmem:[%s1661_s4] ss:$0 sm:$0xff] }
 0x394   :  { %1235 = vrcp.f32 %v540_v9  ;;  %v834_v8 = vpop.xlane.xlu1 %833 }
 0x395   :  { %1237 = vrcp.f32 %v546_v16  ;;  %v688_v45 = vpop.xlane.xlu0 %687 }
 0x396   :  { %1239 = vrcp.f32 %v688_v45 }
 0x397   :  { %1241 = vrcp.f32 %v691_v46 }
 0x398   :  { %1243 = vrcp.f32 %v682_v35  ;;  %v401_v28 = vpop.xlane.xlu1 %400 }
 0x399   :  { %1245 = vrcp.f32 %v685_v2 }
 0x39a   :  { %1247 = vrcp.f32 %v825_v37  ;;  %v831_v62 = vpop.xlane.xlu0 %830 }
 0x39b   :  { %1249 = vrcp.f32 %v828_v36 }
 0x39c   :  { %v1232_v51 = vpop.eup %1231  ;;  %1251 = vrcp.f32 %v831_v62  ;;  %v407_v6 = vpop.xlane.xlu1 %406 }
 0x39d   :  { %v1234_v52 = vpop.eup %1233  ;;  %1253 = vrcp.f32 %v834_v8 }
 0x39e   :  { %v1236_v58 = vpop.eup %1235  ;;  %v398_v30 = vpop.xlane.xlu0 %397 }
 0x39f   :  { %v1238_v60 = vpop.eup %1237  ;;  %1255 = vrcp.f32 %v398_v30 }
 0x3a0   :  { %v1240_v7 = vpop.eup %1239  ;;  %1257 = vrcp.f32 %v401_v28 }
 0x3a1   :  { %v1242_v54 = vpop.eup %1241 }
 0x3a2   :  { %v1244_v18 = vpop.eup %1243  ;;  %v404_v44 = vpop.xlane.xlu0 %403 }
 0x3a3   :  { %v1246_v20 = vpop.eup %1245  ;;  %1259 = vrcp.f32 %v404_v44 }
 0x3a4   :  { %v1248_v22 = vpop.eup %1247  ;;  %1261 = vrcp.f32 %v407_v6 }
 0x3a5   :  { %v1250_v23 = vpop.eup %1249 }
 0x3a6   :  { %v1252_v14 = vpop.eup %1251 }
 0x3a7   :  { %v1254_v38 = vpop.eup %1253 }
 0x3a9   :  { %v1256_v61 = vpop.eup %1255 }
 0x3aa   :  { %v1258_v9 = vpop.eup %1257 }
 0x3ad   :  { %v1260_v43 = vpop.eup %1259 }
 0x3d4   :  { %v1613_v47 = vpop.f32.mrb[4].mxu1 }
 0x3d5   :  { %v1615_v49 = vpop.f32.mrb[5].mxu1 }
 0x3d6   :  { %v1617_v10 = vpop.f32.mrb[6].mxu1  ;;  %v471_v2 = vmul.f32 %v1256_v61, %v1615_v49 }
 0x3d7   :  { %v1619_v50 = vpop.f32.mrb[7].mxu1 }
 0x3d8   :  { %v1128_v29 = vpop.f32.mrb[8].mxu0  ;;  %v472_v36 = vmul.f32 %v1258_v9, %v1619_v50 }
 0x3d9   :  { %v618_v53 = vmul.f32 %v1232_v51, %v1128_v29  ;;  %v597_v39 = vpop.f32.mrb[9].mxu0  ;;  %v1262_v51 = vpop.eup %1261  ;;  %v473_v29 = vmul.f32 %v1260_v43, %v1613_v47 }
 0x3da   :  { %v616_v55 = vmul.f32 %v1234_v52, %v597_v39  ;;  %v1129_v56 = vpop.f32.mrb[10].mxu0 }
 0x3db   :  { %v600_v15 = vpop.f32.mrb[11].mxu0  ;;  %914 = vrot.lane.b32.xlu1 %v618_v53, %s1281_s5  ;;  %v619_v1 = vmul.f32 %v1238_v60, %v1129_v56  ;;  %v474_v53 = vmul.f32 %v1262_v51, %v1617_v10 }
 0x3dc   :  { %v617_v41 = vmul.f32 %v1236_v58, %v600_v15  ;;  %910 = vrot.lane.b32.xlu0 %v616_v55, %s1281_s5  ;;  %v1136_v59 = vpop.f32.mrb[8].mxu1 }
 0x3dd   :  { %v740_v0 = vpop.f32.mrb[9].mxu1  ;;  %v761_v11 = vmul.f32 %v1240_v7, %v1136_v59 }
 0x3de   :  { %v1137_v3 = vpop.f32.mrb[10].mxu1  ;;  %v759_v21 = vmul.f32 %v1244_v18, %v740_v0 }
 0x3df   :  { %912 = vrot.lane.b32.xlu1 %v617_v41, %s1281_s5  ;;  %v743_v4 = vpop.f32.mrb[11].mxu1  ;;  %v762_v13 = vmul.f32 %v1242_v54, %v1137_v3 }
 0x3e0   :  { %916 = vrot.lane.b32.xlu0 %v619_v1, %s1281_s5  ;;  %v760_v63 = vmul.f32 %v1246_v20, %v743_v4 }
 0x3e1   :  { %v1144_v12 = vpop.f32.mrb[12].mxu0 }
 0x3e2   :  { %v883_v17 = vpop.f32.mrb[13].mxu0  ;;  %v904_v26 = vmul.f32 %v1252_v14, %v1144_v12 }
 0x3e3   :  { %v1145_v57 = vpop.f32.mrb[14].mxu0  ;;  %930 = vrot.lane.b32.xlu1 %v761_v11, %s1282_s8  ;;  %v902_v40 = vmul.f32 %v1248_v22, %v883_v17 }
 0x3e4   :  { %v886_v19 = vpop.f32.mrb[15].mxu0  ;;  %932 = vrot.lane.b32.xlu0 %v762_v13, %s1282_s8  ;;  %v905_v25 = vmul.f32 %v1254_v38, %v1145_v57 }
 0x3e5   :  { %v903_v24 = vmul.f32 %v1250_v23, %v886_v19 }
 0x3e7   :  { %926 = vrot.lane.b32.xlu1 %v759_v21, %s1282_s8 }
 0x3e8   :  { %928 = vrot.lane.b32.xlu0 %v760_v63, %s1282_s8 }
 0x3eb   :  { %942 = vrot.lane.b32.xlu1 %v902_v40, %s1283_s9 }
 0x3ec   :  { %944 = vrot.lane.b32.xlu0 %v903_v24, %s1283_s9 }
 0x3ef   :  { %946 = vrot.lane.b32.xlu1 %v904_v26, %s1283_s9 }
 0x3f0   :  { %948 = vrot.lane.b32.xlu0 %v905_v25, %s1283_s9 }
 0x44d   :  { %v915_v27 = vpop.permute.xlu1 %914 }
 0x44e   :  { %v911_v31 = vpop.permute.xlu0 %910  ;;  %v957_v56 = vsel %vm954_vm15, %v473_v29, %v915_v27 }
 0x44f   :  { %v955_v37 = vsel %vm954_vm15, %v471_v2, %v911_v31 }
 0x451   :  { %v913_v32 = vpop.permute.xlu1 %912 }
 0x452   :  { %v917_v5 = vpop.permute.xlu0 %916  ;;  %v956_v16 = vsel %vm954_vm15, %v472_v36, %v913_v32 }
 0x453   :  { %v958_v15 = vsel %vm954_vm15, %v474_v53, %v917_v5 }
 0x455   :  { %v931_v48 = vpop.permute.xlu1 %930 }
 0x456   :  { %v933_v33 = vpop.permute.xlu0 %932  ;;  %v961_v41 = vsel %vm42_vm0, %v957_v56, %v931_v48 }
 0x457   :  { %v962_v47 = vsel %vm42_vm0, %v958_v15, %v933_v33 }
 0x459   :  { %v927_v34 = vpop.permute.xlu1 %926 }
 0x45a   :  { %v929_v35 = vpop.permute.xlu0 %928  ;;  %v959_v45 = vsel %vm42_vm0, %v955_v37, %v927_v34 }
 0x45b   :  { %v960_v49 = vsel %vm42_vm0, %v956_v16, %v929_v35 }
 0x45d   :  { %v943_v46 = vpop.permute.xlu1 %942 }
 0x45e   :  { %v964_v50 = vsel %vm963_vm1, %v959_v45, %v943_v46  ;;  %v945_v52 = vpop.permute.xlu0 %944 }
 0x45f   :  { %v975_v39 = vadd.f32 %v1031_v42, %v964_v50  ;;  %v965_v55 = vsel %vm963_vm1, %v960_v49, %v945_v52 }
 0x460   :  { %v976_v58 = vadd.f32 %v1031_v42, %v965_v55 }
 0x461   :  { %v983_v59 = vmin.f32 %v975_v39, 0.0  ;;  %v947_v60 = vpop.permute.xlu1 %946  ;;  %vm979_vm0 = vcmp.gt.f32.partialorder %v975_v39, 0.0 }
 0x462   :  { %v984_v0 = vmin.f32 %v976_v58, 0.0  ;;  %v966_v1 = vsel %vm963_vm1, %v961_v41, %v947_v60  ;;  %v949_v3 = vpop.permute.xlu0 %948  ;;  %vm980_vm3 = vcmp.gt.f32.partialorder %v976_v58, 0.0 }
 0x463   :  { %v987_v62 = vmul.f32 1.442695, %v983_v59  ;;  %v977_v10 = vadd.f32 %v1031_v42, %v966_v1  ;;  %v967_v4 = vsel %vm963_vm1, %v962_v47, %v949_v3 }
 0x464   :  { %v989_v7 = vmul.f32 1.442695, %v984_v0  ;;  %v978_v8 = vadd.f32 %v1031_v42, %v967_v4 }
 0x465   :  { %1263 = vpow2.f32 %v987_v62  ;;  %v985_v54 = vmin.f32 %v977_v10, 0.0  ;;  %vm981_vm4 = vcmp.gt.f32.partialorder %v977_v10, 0.0 }
 0x466   :  { %1265 = vpow2.f32 %v989_v7  ;;  %v986_v11 = vmin.f32 %v978_v8, 0.0  ;;  %vm982_vm5 = vcmp.gt.f32.partialorder %v978_v8, 0.0 }
 0x467   :  { %v991_v12 = vmul.f32 1.442695, %v985_v54 }
 0x468   :  { %v993_v13 = vmul.f32 1.442695, %v986_v11 }
 0x469   :  { %1267 = vpow2.f32 %v991_v12 }
 0x46a   :  { %1269 = vpow2.f32 %v993_v13 }
 0x46f   :  { %v1264_v17 = vpop.eup %1263 }
 0x470   :  { %v1266_v57 = vpop.eup %1265  ;;  %v1032_v18 = vadd.f32 -1.0, %v1264_v17 }
 0x471   :  { %v1033_v19 = vadd.f32 -1.0, %v1266_v57 }
 0x472   :  { %v999_v20 = vsel %vm979_vm0, %v975_v39, %v1032_v18 }
 0x473   :  { %v1268_v21 = vpop.eup %1267  ;;  %1004 = vst.msk [vmem:[%s1662_s6] sm:$0xff] %vm98_vm2, %v999_v20  ;;  %v1000_v63 = vsel %vm980_vm3, %v976_v58, %v1033_v19 }
 0x474   :  { %v1270_v22 = vpop.eup %1269  ;;  %1005 = vst.msk [vmem:[%s1662_s6 + $0x8] sm:$0xff] %vm98_vm2, %v1000_v63  ;;  %v1034_v23 = vadd.f32 -1.0, %v1268_v21 }
 0x475   :  { %v1035_v40 = vadd.f32 -1.0, %v1270_v22 }
 0x476   :  { %v1001_v24 = vsel %vm981_vm4, %v977_v10, %v1034_v23 }
 0x477   :  { %1006 = vst.msk [vmem:[%s1662_s6 + $0x10] sm:$0xff] %vm98_vm2, %v1001_v24  ;;  %v1002_v14 = vsel %vm982_vm5, %v978_v8, %v1035_v40 }
 0x478   :  { %1007 = vst.msk [vmem:[%s1662_s6 + $0x18] sm:$0xff] %vm98_vm2, %v1002_v14 }

</bundles_post_ra>
